<compile_context>
chip_gen: v5e
topology: v5e:2x2
jax: 0.10.0
libtpu: 0.0.40
codegen_flags: <defaults>
</compile_context>

<pallas_src>
import functools
import math

import jax
import jax.numpy as jnp
from jax.experimental import pallas as pl
from jax.experimental.pallas import tpu as pltpu

LN_EPS = 1e-5


def _round_up(x, m):
    return ((x + m - 1) // m) * m


def _vmem_capacity_bytes():
    """Generation-aware VMEM capacity (v5e/v6e: 128 MiB, v7x: 64 MiB per core)."""
    try:
        return int(pltpu.get_tpu_info().vmem_capacity_bytes)
    except Exception:
        return 64 * 1024 * 1024          # conservative (v7x-sized) fallback


def _layer_norm_f32(v, gamma_row, beta_row):
    """Two-pass LayerNorm over the lane (last) axis, f32 math. v: (T, C)."""
    mean = jnp.mean(v, axis=-1, keepdims=True)
    d = v - mean
    var = jnp.mean(d * d, axis=-1, keepdims=True)
    return d * jax.lax.rsqrt(var + LN_EPS) * gamma_row + beta_row


def _tds_pair_kernel(xa_ref, xb_ref, wconv_ref, wfc_ref, vecs_ref, o_ref, *, kw):
    """Fused conv-block + FC-block for one (time tile, batch element).

    xa_ref   : (tile_t, C)   padded-input rows [t*tile_t, (t+1)*tile_t)
    xb_ref   : (tile_t, C)   padded-input rows [(t+1)*tile_t, (t+2)*tile_t)  (halo)
    wconv_ref: (kw*C, C)     bf16 stacked block-diagonal conv weight
    wfc_ref  : (2, C, C)     bf16 [fc1_w^T, fc2_w^T]
    vecs_ref : (8, C)        f32  conv_b, ln1_g, ln1_b, fc1_b, fc2_b, ln2_g, ln2_b, 0
    o_ref    : (tile_t, C)   output tile
    """
    tile_t = o_ref.shape[0]
    vecs = vecs_ref[...]                                        # (8, C) f32

    # Halo window covering padded rows [t*tile_t, (t+2)*tile_t).
    window = jnp.concatenate([xa_ref[...], xb_ref[...]], axis=0)        # (2*tile_t, C)

    # Stacked conv contraction: one (tile_t, kw*C) @ (kw*C, C) MXU issue.
    # (Shifts are static slices of an in-register value; cast to bf16 once.)
    x_stack = jnp.concatenate([window[k:k + tile_t, :] for k in range(kw)],
                              axis=1).astype(jnp.bfloat16)              # (tile_t, kw*C)
    acc = jnp.dot(x_stack, wconv_ref[...], preferred_element_type=jnp.float32)
    acc = jnp.maximum(acc + vecs[0:1], 0.0)                     # conv bias + ReLU
    # TODO(synk): nn.Dropout is stochastic in training mode; identity here (eval mode).

    y = _layer_norm_f32(acc, vecs[1:2], vecs[2:3])

    # FC block: Linear -> ReLU -> (dropout=id) -> Linear -> LayerNorm.
    h = jnp.dot(y.astype(jnp.bfloat16), wfc_ref[0],
                preferred_element_type=jnp.float32) + vecs[3:4]
    h = jnp.maximum(h, 0.0)
    z = jnp.dot(h.astype(jnp.bfloat16), wfc_ref[1],
                preferred_element_type=jnp.float32) + vecs[4:5]

    o_ref[...] = _layer_norm_f32(z, vecs[5:6], vecs[6:7]).astype(o_ref.dtype)


def _tds_pair_block(x_ntc, params, *, channels, width, kernel_width):
    """One (conv block + FC block) pair. x_ntc: (N, T_in, C). Returns (N, T_out, C)."""
    N, T_in, C = x_ntc.shape
    assert C == channels * width
    kw = kernel_width
    pad = (kw - 1) // 2
    T_out = T_in + 2 * pad - kw + 1
    assert T_out >= 1

    vmem_cap = _vmem_capacity_bytes()
    tile_t_max = 512 if vmem_cap >= 100 * 1024 * 1024 else 256   # v5e/v6e vs v7x
    tile_t = _round_up(min(max(T_out, kw - 1), tile_t_max), 8)
    num_t = pl.cdiv(T_out, tile_t)
    assert kw - 1 <= tile_t, "time tile must cover the conv halo"

    # Zero-padded, halo-aligned time layout: rows [pad, pad+T_in) hold the data,
    # everything else is the conv zero padding / tile tail. (num_t+1) blocks so the
    # t+1 halo block is always in-bounds.
    t_total = (num_t + 1) * tile_t
    x_pad = jnp.pad(x_ntc, ((0, 0), (pad, t_total - pad - T_in), (0, 0)))

    # ---- weight prep (once, outside the kernel) ----
    # Block-diagonal conv weight: W_bd[k] = kron(conv_w[:,:,0,k].T, I_width)  (C, C),
    # stacked along the contraction dim -> (kw*C, C).
    # TODO(synk): the kron trick pays `width`x extra MXU FLOPs (1/width dense); for
    # MXU-bound production configs restructure the contraction over kw*channels only.
    wk = jnp.transpose(params["conv_w"][:, :, 0, :], (2, 1, 0))          # (kw, cin, cout)
    eye_w = jnp.eye(width, dtype=wk.dtype)
    w_bd = jnp.einsum("kio,wv->kiwov", wk, eye_w).reshape(kw, C, C)
    w_conv = w_bd.reshape(kw * C, C).astype(jnp.bfloat16)
    w_fc = jnp.stack([params["fc1_w"].T, params["fc2_w"].T]).astype(jnp.bfloat16)
    vecs = jnp.stack([jnp.repeat(params["conv_b"], width),
                      params["ln1_g"], params["ln1_b"],
                      params["fc1_b"], params["fc2_b"],
                      params["ln2_g"], params["ln2_b"],
                      jnp.zeros((C,), jnp.float32)], axis=0)             # (8, C) f32

    kernel = functools.partial(_tds_pair_kernel, kw=kw)

    itx = jnp.dtype(x_ntc.dtype).itemsize
    rows = N * num_t * tile_t
    cost = pl.CostEstimate(
        flops=2 * rows * C * C * (kw + 2),
        transcendentals=2 * rows,
        bytes_accessed=itx * (2 * int(x_pad.size) + N * T_out * C)
        + 2 * (int(w_conv.size) + int(w_fc.size)) + 4 * int(vecs.size))

    # VMEM budget from actual itemsizes (bf16 weights single-buffered).
    need = (3 * 2 * tile_t * C * itx                 # xa / xb / out, double-buffered
            + (kw + 2) * C * C * 2 + 8 * C * 4       # bf16 weights + f32 vecs
            + tile_t * kw * C * 2                    # x_stack staging
            + 4 * tile_t * C * 4)                    # f32 temporaries
    vmem_limit = int(min(max(3 * need, 32 * 1024 * 1024), int(0.85 * vmem_cap)))

    def run(single_buffer_weights):
        if single_buffer_weights:
            def const_spec(shape, imap):
                return pl.BlockSpec(shape, imap, pipeline_mode=pl.Buffered(1))
        else:
            def const_spec(shape, imap):
                return pl.BlockSpec(shape, imap)
        return pl.pallas_call(
            kernel,
            out_shape=jax.ShapeDtypeStruct((N, T_out, C), x_ntc.dtype),
            grid=(num_t, N),                                    # time leads (v7x 2-TC)
            in_specs=[
                pl.BlockSpec((None, tile_t, C), lambda t, n: (n, t, 0)),
                pl.BlockSpec((None, tile_t, C), lambda t, n: (n, t + 1, 0)),
                const_spec((kw * C, C), lambda t, n: (0, 0)),
                const_spec((2, C, C), lambda t, n: (0, 0, 0)),
                const_spec((8, C), lambda t, n: (0, 0)),
            ],
            out_specs=pl.BlockSpec((None, tile_t, C), lambda t, n: (n, t, 0)),
            compiler_params=pltpu.CompilerParams(
                dimension_semantics=("parallel", "parallel"),
                vmem_limit_bytes=vmem_limit),
            cost_estimate=cost,
        )(x_pad, x_pad, w_conv, w_fc, vecs)

    try:
        return run(True)
    except Exception:
        # Fallback for jax builds without BlockSpec(pipeline_mode=pl.Buffered(1)).
        return run(False)


def tds_conv_encoder_noskip(inputs, block_params, *, block_channels, kernel_width):
    """TDSConvEncoderNoSkip forward (eval mode). inputs: (T, N, C) -> (T_final, N, C)."""
    T, N, C = inputs.shape
    # Single transpose into the lane-dense (N, T, C) layout used by every fused pair.
    x = jnp.transpose(inputs, (1, 0, 2))
    for channels, p in zip(block_channels, block_params):
        assert C % channels == 0, "block_channels must evenly divide num_features"
        x = _tds_pair_block(x, p, channels=channels, width=C // channels,
                            kernel_width=kernel_width)
    return jnp.transpose(x, (1, 0, 2))


# ----------------------------- pure-JAX reference -----------------------------

def _ln_ref(v, g, b):
    m = v.mean(-1, keepdims=True)
    var = ((v - m) ** 2).mean(-1, keepdims=True)
    return (v - m) / jnp.sqrt(var + LN_EPS) * g + b


def ref_encoder(inputs, block_params, *, block_channels, kernel_width):
    """Mirrors the PyTorch module (eval mode), pure f32."""
    x = inputs.astype(jnp.float32)
    kw = kernel_width
    pad = (kw - 1) // 2
    for channels, p in zip(block_channels, block_params):
        T_in, N, C = x.shape
        width = C // channels
        xr = jnp.transpose(x, (1, 2, 0)).reshape(N, channels, width, T_in)
        xp = jnp.pad(xr, ((0, 0), (0, 0), (0, 0), (pad, pad)))
        T_out = T_in + 2 * pad - kw + 1
        out = jnp.zeros((N, channels, width, T_out), jnp.float32)
        for k in range(kw):
            out = out + jnp.einsum("niwt,oi->nowt", xp[..., k:k + T_out],
                                   p["conv_w"][:, :, 0, k])
        out = out + p["conv_b"][None, :, None, None]
        out = jnp.maximum(out, 0.0)
        out = jnp.moveaxis(out.reshape(N, C, T_out), -1, 0)      # (T_out, N, C)
        out = _ln_ref(out, p["ln1_g"], p["ln1_b"])
        h = jnp.maximum(out @ p["fc1_w"].T + p["fc1_b"], 0.0)
        z = h @ p["fc2_w"].T + p["fc2_b"]
        x = _ln_ref(z, p["ln2_g"], p["ln2_b"])
    return x


def _init_block_params(key, channels, width, kw):
    C = channels * width
    ks = jax.random.split(key, 10)
    conv_w = jax.random.normal(ks[0], (channels, channels, 1, kw), jnp.float32)
    conv_w = conv_w / math.sqrt(channels * kw)
    conv_b = 0.1 * jax.random.normal(ks[1], (channels,), jnp.float32)
    fc1_w = jax.random.normal(ks[2], (C, C), jnp.float32) / math.sqrt(C)
    fc1_b = 0.1 * jax.random.normal(ks[3], (C,), jnp.float32)
    fc2_w = jax.random.normal(ks[4], (C, C), jnp.float32) / math.sqrt(C)
    fc2_b = 0.1 * jax.random.normal(ks[5], (C,), jnp.float32)
    ln1_g = 1.0 + 0.1 * jax.random.normal(ks[6], (C,), jnp.float32)
    ln1_b = 0.1 * jax.random.normal(ks[7], (C,), jnp.float32)
    ln2_g = 1.0 + 0.1 * jax.random.normal(ks[8], (C,), jnp.float32)
    ln2_b = 0.1 * jax.random.normal(ks[9], (C,), jnp.float32)
    return dict(conv_w=conv_w, conv_b=conv_b, ln1_g=ln1_g, ln1_b=ln1_b,
                fc1_w=fc1_w, fc1_b=fc1_b, fc2_w=fc2_w, fc2_b=fc2_b,
                ln2_g=ln2_g, ln2_b=ln2_b)


if __name__ == "__main__":
    num_features = 128           # multiple of 128 -> lane-dense, unmasked stores
    block_channels = (4, 8)      # widths 32 and 16
    kernel_width = 8             # even kernel -> T shrinks by 1 per conv block
    T_in, N = 16, 2

    key = jax.random.PRNGKey(0)
    k_in, *k_blocks = jax.random.split(key, 1 + len(block_channels))
    inputs = jax.random.normal(k_in, (T_in, N, num_features), jnp.float32)
    params = [_init_block_params(kb, c, num_features // c, kernel_width)
              for kb, c in zip(k_blocks, block_channels)]

    out = tds_conv_encoder_noskip(inputs, params, block_channels=block_channels,
                                  kernel_width=kernel_width)
    out = jax.block_until_ready(out)

    ref = ref_encoder(inputs, params, block_channels=block_channels,
                      kernel_width=kernel_width)

    pad = (kernel_width - 1) // 2
    T_final = T_in + len(block_channels) * (2 * pad - kernel_width + 1)
    assert out.shape == (T_final, N, num_features), out.shape
    # bf16 weights / MXU operands (f32 accumulation) give ~1e-2-level deviation from
    # the pure-f32 reference after two blocks; with f32 weights it matches to ~1e-5.
    if not jnp.allclose(out, ref, atol=8e-2, rtol=8e-2):
        err = float(jnp.max(jnp.abs(out - ref)))
        raise AssertionError(f"mismatch vs reference, max abs err = {err}")
    print("KERNEL_OK")
</pallas_src>

<mosaic_0001>
module attributes {stable_mosaic.version = 11 : i64} {
  func.func @_tds_pair_kernel(%arg0: i32, %arg1: i32, %arg2: memref<1x16x128xf32, #tpu.memory_space<vmem>>, %arg3: memref<1x16x128xf32, #tpu.memory_space<vmem>>, %arg4: memref<1024x128xbf16, #tpu.memory_space<vmem>>, %arg5: memref<2x128x128xbf16, #tpu.memory_space<vmem>>, %arg6: memref<8x128xf32, #tpu.memory_space<vmem>>, %arg7: memref<1x16x128xf32, #tpu.memory_space<vmem>>) attributes {dimension_semantics = [#tpu.dimension_semantics<parallel>, #tpu.dimension_semantics<parallel>], iteration_bounds = array<i64: 1, 2>, scalar_prefetch = 0 : i64, scratch_operands = 0 : i64, tpu.core_type = #tpu.core_type<tc>, window_params = [{transform_indices = @transform_0, window_bounds = array<i64: 1, 16, 128>}, {transform_indices = @transform_1, window_bounds = array<i64: 1, 16, 128>}, {pipeline_mode = #tpu.pipeline_mode<synchronous>, transform_indices = @transform_2, window_bounds = array<i64: 1024, 128>}, {pipeline_mode = #tpu.pipeline_mode<synchronous>, transform_indices = @transform_3, window_bounds = array<i64: 2, 128, 128>}, {pipeline_mode = #tpu.pipeline_mode<synchronous>, transform_indices = @transform_4, window_bounds = array<i64: 8, 128>}, {transform_indices = @transform_5, window_bounds = array<i64: 1, 16, 128>}]} {
    %c0 = arith.constant 0 : index
    %c0_0 = arith.constant 0 : index
    %0 = vector.load %arg6[%c0, %c0_0] : memref<8x128xf32, #tpu.memory_space<vmem>>, vector<8x128xf32>
    %c0_1 = arith.constant 0 : index
    %c0_2 = arith.constant 0 : index
    %c0_3 = arith.constant 0 : index
    %1 = vector.load %arg2[%c0_1, %c0_2, %c0_3] : memref<1x16x128xf32, #tpu.memory_space<vmem>>, vector<1x16x128xf32>
    %2 = vector.shape_cast %1 : vector<1x16x128xf32> to vector<16x128xf32>
    %c0_4 = arith.constant 0 : index
    %c0_5 = arith.constant 0 : index
    %c0_6 = arith.constant 0 : index
    %3 = vector.load %arg3[%c0_4, %c0_5, %c0_6] : memref<1x16x128xf32, #tpu.memory_space<vmem>>, vector<1x16x128xf32>
    %4 = vector.shape_cast %3 : vector<1x16x128xf32> to vector<16x128xf32>
    %5 = tpu.concatenate %2, %4 in 0 : vector<16x128xf32>, vector<16x128xf32> -> vector<32x128xf32>
    %6 = vector.extract_strided_slice %5 {offsets = [0, 0], sizes = [16, 128], strides = [1, 1]} : vector<32x128xf32> to vector<16x128xf32>
    %7 = vector.extract_strided_slice %5 {offsets = [1, 0], sizes = [16, 128], strides = [1, 1]} : vector<32x128xf32> to vector<16x128xf32>
    %8 = vector.extract_strided_slice %5 {offsets = [2, 0], sizes = [16, 128], strides = [1, 1]} : vector<32x128xf32> to vector<16x128xf32>
    %9 = vector.extract_strided_slice %5 {offsets = [3, 0], sizes = [16, 128], strides = [1, 1]} : vector<32x128xf32> to vector<16x128xf32>
    %10 = vector.extract_strided_slice %5 {offsets = [4, 0], sizes = [16, 128], strides = [1, 1]} : vector<32x128xf32> to vector<16x128xf32>
    %11 = vector.extract_strided_slice %5 {offsets = [5, 0], sizes = [16, 128], strides = [1, 1]} : vector<32x128xf32> to vector<16x128xf32>
    %12 = vector.extract_strided_slice %5 {offsets = [6, 0], sizes = [16, 128], strides = [1, 1]} : vector<32x128xf32> to vector<16x128xf32>
    %13 = vector.extract_strided_slice %5 {offsets = [7, 0], sizes = [16, 128], strides = [1, 1]} : vector<32x128xf32> to vector<16x128xf32>
    %14 = tpu.concatenate %6, %7, %8, %9, %10, %11, %12, %13 in 1 : vector<16x128xf32>, vector<16x128xf32>, vector<16x128xf32>, vector<16x128xf32>, vector<16x128xf32>, vector<16x128xf32>, vector<16x128xf32>, vector<16x128xf32> -> vector<16x1024xf32>
    %15 = arith.truncf %14 : vector<16x1024xf32> to vector<16x1024xbf16>
    %c0_7 = arith.constant 0 : index
    %c0_8 = arith.constant 0 : index
    %16 = vector.load %arg4[%c0_7, %c0_8] : memref<1024x128xbf16, #tpu.memory_space<vmem>>, vector<1024x128xbf16>
    %cst = arith.constant dense<0.000000e+00> : vector<16x128xf32>
    %17 = tpu.matmul %15, %16, %cst {dimension_numbers = #tpu.dot_dimension_numbers<[1], [0], [0], [1], [0, 0, 1, 1], [], []>} : vector<16x1024xbf16>, vector<1024x128xbf16>, vector<16x128xf32> -> vector<16x128xf32>
    %18 = vector.extract_strided_slice %0 {offsets = [0, 0], sizes = [1, 128], strides = [1, 1]} : vector<8x128xf32> to vector<1x128xf32>
    %19 = vector.broadcast %18 : vector<1x128xf32> to vector<16x128xf32>
    %20 = arith.addf %17, %19 : vector<16x128xf32>
    %cst_9 = arith.constant 0.000000e+00 : f32
    %21 = vector.broadcast %cst_9 : f32 to vector<16x128xf32>
    %22 = arith.maximumf %20, %21 : vector<16x128xf32>
    %23 = vector.extract_strided_slice %0 {offsets = [1, 0], sizes = [1, 128], strides = [1, 1]} : vector<8x128xf32> to vector<1x128xf32>
    %24 = vector.extract_strided_slice %0 {offsets = [2, 0], sizes = [1, 128], strides = [1, 1]} : vector<8x128xf32> to vector<1x128xf32>
    %cst_10 = arith.constant dense<0.000000e+00> : vector<16xf32>
    %25 = vector.multi_reduction <add>, %22, %cst_10 [1] : vector<16x128xf32> to vector<16xf32>
    %26 = vector.shape_cast %25 : vector<16xf32> to vector<16x1xf32>
    %cst_11 = arith.constant 1.280000e+02 : f32
    %27 = vector.broadcast %cst_11 : f32 to vector<16x1xf32>
    %28 = arith.divf %26, %27 : vector<16x1xf32>
    %29 = vector.broadcast %28 : vector<16x1xf32> to vector<16x128xf32>
    %30 = arith.subf %22, %29 : vector<16x128xf32>
    %31 = arith.mulf %30, %30 : vector<16x128xf32>
    %cst_12 = arith.constant dense<0.000000e+00> : vector<16xf32>
    %32 = vector.multi_reduction <add>, %31, %cst_12 [1] : vector<16x128xf32> to vector<16xf32>
    %33 = vector.shape_cast %32 : vector<16xf32> to vector<16x1xf32>
    %cst_13 = arith.constant 1.280000e+02 : f32
    %34 = vector.broadcast %cst_13 : f32 to vector<16x1xf32>
    %35 = arith.divf %33, %34 : vector<16x1xf32>
    %cst_14 = arith.constant 9.99999974E-6 : f32
    %36 = vector.broadcast %cst_14 : f32 to vector<16x1xf32>
    %37 = arith.addf %35, %36 : vector<16x1xf32>
    %38 = math.rsqrt %37 : vector<16x1xf32>
    %39 = vector.broadcast %38 : vector<16x1xf32> to vector<16x128xf32>
    %40 = arith.mulf %30, %39 : vector<16x128xf32>
    %41 = vector.broadcast %23 : vector<1x128xf32> to vector<16x128xf32>
    %42 = arith.mulf %40, %41 : vector<16x128xf32>
    %43 = vector.broadcast %24 : vector<1x128xf32> to vector<16x128xf32>
    %44 = arith.addf %42, %43 : vector<16x128xf32>
    %45 = arith.truncf %44 : vector<16x128xf32> to vector<16x128xbf16>
    %c0_15 = arith.constant 0 : index
    %c0_16 = arith.constant 0 : index
    %c0_17 = arith.constant 0 : index
    %46 = vector.load %arg5[%c0_15, %c0_16, %c0_17] : memref<2x128x128xbf16, #tpu.memory_space<vmem>>, vector<1x128x128xbf16>
    %47 = vector.shape_cast %46 : vector<1x128x128xbf16> to vector<128x128xbf16>
    %cst_18 = arith.constant dense<0.000000e+00> : vector<16x128xf32>
    %48 = tpu.matmul %45, %47, %cst_18 {dimension_numbers = #tpu.dot_dimension_numbers<[1], [0], [0], [1], [0, 0, 1, 1], [], []>} : vector<16x128xbf16>, vector<128x128xbf16>, vector<16x128xf32> -> vector<16x128xf32>
    %49 = vector.extract_strided_slice %0 {offsets = [3, 0], sizes = [1, 128], strides = [1, 1]} : vector<8x128xf32> to vector<1x128xf32>
    %50 = vector.broadcast %49 : vector<1x128xf32> to vector<16x128xf32>
    %51 = arith.addf %48, %50 : vector<16x128xf32>
    %cst_19 = arith.constant 0.000000e+00 : f32
    %52 = vector.broadcast %cst_19 : f32 to vector<16x128xf32>
    %53 = arith.maximumf %51, %52 : vector<16x128xf32>
    %54 = arith.truncf %53 : vector<16x128xf32> to vector<16x128xbf16>
    %c1 = arith.constant 1 : index
    %c0_20 = arith.constant 0 : index
    %c0_21 = arith.constant 0 : index
    %55 = vector.load %arg5[%c1, %c0_20, %c0_21] : memref<2x128x128xbf16, #tpu.memory_space<vmem>>, vector<1x128x128xbf16>
    %56 = vector.shape_cast %55 : vector<1x128x128xbf16> to vector<128x128xbf16>
    %cst_22 = arith.constant dense<0.000000e+00> : vector<16x128xf32>
    %57 = tpu.matmul %54, %56, %cst_22 {dimension_numbers = #tpu.dot_dimension_numbers<[1], [0], [0], [1], [0, 0, 1, 1], [], []>} : vector<16x128xbf16>, vector<128x128xbf16>, vector<16x128xf32> -> vector<16x128xf32>
    %58 = vector.extract_strided_slice %0 {offsets = [4, 0], sizes = [1, 128], strides = [1, 1]} : vector<8x128xf32> to vector<1x128xf32>
    %59 = vector.broadcast %58 : vector<1x128xf32> to vector<16x128xf32>
    %60 = arith.addf %57, %59 : vector<16x128xf32>
    %61 = vector.extract_strided_slice %0 {offsets = [5, 0], sizes = [1, 128], strides = [1, 1]} : vector<8x128xf32> to vector<1x128xf32>
    %62 = vector.extract_strided_slice %0 {offsets = [6, 0], sizes = [1, 128], strides = [1, 1]} : vector<8x128xf32> to vector<1x128xf32>
    %cst_23 = arith.constant dense<0.000000e+00> : vector<16xf32>
    %63 = vector.multi_reduction <add>, %60, %cst_23 [1] : vector<16x128xf32> to vector<16xf32>
    %64 = vector.shape_cast %63 : vector<16xf32> to vector<16x1xf32>
    %cst_24 = arith.constant 1.280000e+02 : f32
    %65 = vector.broadcast %cst_24 : f32 to vector<16x1xf32>
    %66 = arith.divf %64, %65 : vector<16x1xf32>
    %67 = vector.broadcast %66 : vector<16x1xf32> to vector<16x128xf32>
    %68 = arith.subf %60, %67 : vector<16x128xf32>
    %69 = arith.mulf %68, %68 : vector<16x128xf32>
    %cst_25 = arith.constant dense<0.000000e+00> : vector<16xf32>
    %70 = vector.multi_reduction <add>, %69, %cst_25 [1] : vector<16x128xf32> to vector<16xf32>
    %71 = vector.shape_cast %70 : vector<16xf32> to vector<16x1xf32>
    %cst_26 = arith.constant 1.280000e+02 : f32
    %72 = vector.broadcast %cst_26 : f32 to vector<16x1xf32>
    %73 = arith.divf %71, %72 : vector<16x1xf32>
    %cst_27 = arith.constant 9.99999974E-6 : f32
    %74 = vector.broadcast %cst_27 : f32 to vector<16x1xf32>
    %75 = arith.addf %73, %74 : vector<16x1xf32>
    %76 = math.rsqrt %75 : vector<16x1xf32>
    %77 = vector.broadcast %76 : vector<16x1xf32> to vector<16x128xf32>
    %78 = arith.mulf %68, %77 : vector<16x128xf32>
    %79 = vector.broadcast %61 : vector<1x128xf32> to vector<16x128xf32>
    %80 = arith.mulf %78, %79 : vector<16x128xf32>
    %81 = vector.broadcast %62 : vector<1x128xf32> to vector<16x128xf32>
    %82 = arith.addf %80, %81 : vector<16x128xf32>
    %c0_28 = arith.constant 0 : index
    %c0_29 = arith.constant 0 : index
    %c0_30 = arith.constant 0 : index
    %83 = vector.load %arg7[%c0_28, %c0_29, %c0_30] : memref<1x16x128xf32, #tpu.memory_space<vmem>>, vector<1x16x128xf32>
    %84 = vector.shape_cast %83 : vector<1x16x128xf32> to vector<16x128xf32>
    %85 = vector.shape_cast %82 : vector<16x128xf32> to vector<1x16x128xf32>
    tpu.vector_store %arg7[%c0_28, %c0_29, %c0_30], %85 {strides = array<i32>} : memref<1x16x128xf32, #tpu.memory_space<vmem>>, vector<1x16x128xf32>,
    return
  }
  func.func @transform_0(%arg0: i32, %arg1: i32) -> (i32, i32, i32) {
    %c0_i32 = arith.constant 0 : i32
    %c0_i32_0 = arith.constant 0 : i32
    return %arg1, %arg0, %c0_i32 : i32, i32, i32
  }
  func.func @transform_1(%arg0: i32, %arg1: i32) -> (i32, i32, i32) {
    %c1_i32 = arith.constant 1 : i32
    %0 = arith.addi %arg0, %c1_i32 : i32
    %c0_i32 = arith.constant 0 : i32
    %c0_i32_0 = arith.constant 0 : i32
    return %arg1, %0, %c0_i32 : i32, i32, i32
  }
  func.func @transform_2(%arg0: i32, %arg1: i32) -> (i32, i32) {
    %c0_i32 = arith.constant 0 : i32
    %c0_i32_0 = arith.constant 0 : i32
    %c0_i32_1 = arith.constant 0 : i32
    return %c0_i32, %c0_i32_0 : i32, i32
  }
  func.func @transform_3(%arg0: i32, %arg1: i32) -> (i32, i32, i32) {
    %c0_i32 = arith.constant 0 : i32
    %c0_i32_0 = arith.constant 0 : i32
    %c0_i32_1 = arith.constant 0 : i32
    %c0_i32_2 = arith.constant 0 : i32
    return %c0_i32, %c0_i32_0, %c0_i32_1 : i32, i32, i32
  }
  func.func @transform_4(%arg0: i32, %arg1: i32) -> (i32, i32) {
    %c0_i32 = arith.constant 0 : i32
    %c0_i32_0 = arith.constant 0 : i32
    %c0_i32_1 = arith.constant 0 : i32
    return %c0_i32, %c0_i32_0 : i32, i32
  }
  func.func @transform_5(%arg0: i32, %arg1: i32) -> (i32, i32, i32) {
    %c0_i32 = arith.constant 0 : i32
    %c0_i32_0 = arith.constant 0 : i32
    return %arg1, %arg0, %c0_i32 : i32, i32, i32
  }
}

module attributes {stable_mosaic.version = 11 : i64} {
  func.func @_tds_pair_kernel(%arg0: i32, %arg1: i32, %arg2: memref<1x16x128xf32, #tpu.memory_space<vmem>>, %arg3: memref<1x16x128xf32, #tpu.memory_space<vmem>>, %arg4: memref<1024x128xbf16, #tpu.memory_space<vmem>>, %arg5: memref<2x128x128xbf16, #tpu.memory_space<vmem>>, %arg6: memref<8x128xf32, #tpu.memory_space<vmem>>, %arg7: memref<1x16x128xf32, #tpu.memory_space<vmem>>) attributes {dimension_semantics = [#tpu.dimension_semantics<parallel>, #tpu.dimension_semantics<parallel>], iteration_bounds = array<i64: 1, 2>, scalar_prefetch = 0 : i64, scratch_operands = 0 : i64, tpu.core_type = #tpu.core_type<tc>, window_params = [{transform_indices = @transform_0, window_bounds = array<i64: 1, 16, 128>}, {transform_indices = @transform_1, window_bounds = array<i64: 1, 16, 128>}, {pipeline_mode = #tpu.pipeline_mode<synchronous>, transform_indices = @transform_2, window_bounds = array<i64: 1024, 128>}, {pipeline_mode = #tpu.pipeline_mode<synchronous>, transform_indices = @transform_3, window_bounds = array<i64: 2, 128, 128>}, {pipeline_mode = #tpu.pipeline_mode<synchronous>, transform_indices = @transform_4, window_bounds = array<i64: 8, 128>}, {transform_indices = @transform_5, window_bounds = array<i64: 1, 16, 128>}]} {
    %c0 = arith.constant 0 : index
    %c0_0 = arith.constant 0 : index
    %0 = vector.load %arg6[%c0, %c0_0] : memref<8x128xf32, #tpu.memory_space<vmem>>, vector<8x128xf32>
    %c0_1 = arith.constant 0 : index
    %c0_2 = arith.constant 0 : index
    %c0_3 = arith.constant 0 : index
    %1 = vector.load %arg2[%c0_1, %c0_2, %c0_3] : memref<1x16x128xf32, #tpu.memory_space<vmem>>, vector<1x16x128xf32>
    %2 = vector.shape_cast %1 : vector<1x16x128xf32> to vector<16x128xf32>
    %c0_4 = arith.constant 0 : index
    %c0_5 = arith.constant 0 : index
    %c0_6 = arith.constant 0 : index
    %3 = vector.load %arg3[%c0_4, %c0_5, %c0_6] : memref<1x16x128xf32, #tpu.memory_space<vmem>>, vector<1x16x128xf32>
    %4 = vector.shape_cast %3 : vector<1x16x128xf32> to vector<16x128xf32>
    %5 = tpu.concatenate %2, %4 in 0 : vector<16x128xf32>, vector<16x128xf32> -> vector<32x128xf32>
    %6 = vector.extract_strided_slice %5 {offsets = [0, 0], sizes = [16, 128], strides = [1, 1]} : vector<32x128xf32> to vector<16x128xf32>
    %7 = vector.extract_strided_slice %5 {offsets = [1, 0], sizes = [16, 128], strides = [1, 1]} : vector<32x128xf32> to vector<16x128xf32>
    %8 = vector.extract_strided_slice %5 {offsets = [2, 0], sizes = [16, 128], strides = [1, 1]} : vector<32x128xf32> to vector<16x128xf32>
    %9 = vector.extract_strided_slice %5 {offsets = [3, 0], sizes = [16, 128], strides = [1, 1]} : vector<32x128xf32> to vector<16x128xf32>
    %10 = vector.extract_strided_slice %5 {offsets = [4, 0], sizes = [16, 128], strides = [1, 1]} : vector<32x128xf32> to vector<16x128xf32>
    %11 = vector.extract_strided_slice %5 {offsets = [5, 0], sizes = [16, 128], strides = [1, 1]} : vector<32x128xf32> to vector<16x128xf32>
    %12 = vector.extract_strided_slice %5 {offsets = [6, 0], sizes = [16, 128], strides = [1, 1]} : vector<32x128xf32> to vector<16x128xf32>
    %13 = vector.extract_strided_slice %5 {offsets = [7, 0], sizes = [16, 128], strides = [1, 1]} : vector<32x128xf32> to vector<16x128xf32>
    %14 = tpu.concatenate %6, %7, %8, %9, %10, %11, %12, %13 in 1 : vector<16x128xf32>, vector<16x128xf32>, vector<16x128xf32>, vector<16x128xf32>, vector<16x128xf32>, vector<16x128xf32>, vector<16x128xf32>, vector<16x128xf32> -> vector<16x1024xf32>
    %15 = arith.truncf %14 : vector<16x1024xf32> to vector<16x1024xbf16>
    %c0_7 = arith.constant 0 : index
    %c0_8 = arith.constant 0 : index
    %16 = vector.load %arg4[%c0_7, %c0_8] : memref<1024x128xbf16, #tpu.memory_space<vmem>>, vector<1024x128xbf16>
    %cst = arith.constant dense<0.000000e+00> : vector<16x128xf32>
    %17 = tpu.matmul %15, %16, %cst {dimension_numbers = #tpu.dot_dimension_numbers<[1], [0], [0], [1], [0, 0, 1, 1], [], []>} : vector<16x1024xbf16>, vector<1024x128xbf16>, vector<16x128xf32> -> vector<16x128xf32>
    %18 = vector.extract_strided_slice %0 {offsets = [0, 0], sizes = [1, 128], strides = [1, 1]} : vector<8x128xf32> to vector<1x128xf32>
    %19 = vector.broadcast %18 : vector<1x128xf32> to vector<16x128xf32>
    %20 = arith.addf %17, %19 : vector<16x128xf32>
    %cst_9 = arith.constant 0.000000e+00 : f32
    %21 = vector.broadcast %cst_9 : f32 to vector<16x128xf32>
    %22 = arith.maximumf %20, %21 : vector<16x128xf32>
    %23 = vector.extract_strided_slice %0 {offsets = [1, 0], sizes = [1, 128], strides = [1, 1]} : vector<8x128xf32> to vector<1x128xf32>
    %24 = vector.extract_strided_slice %0 {offsets = [2, 0], sizes = [1, 128], strides = [1, 1]} : vector<8x128xf32> to vector<1x128xf32>
    %cst_10 = arith.constant dense<0.000000e+00> : vector<16xf32>
    %25 = vector.multi_reduction <add>, %22, %cst_10 [1] : vector<16x128xf32> to vector<16xf32>
    %26 = vector.shape_cast %25 : vector<16xf32> to vector<16x1xf32>
    %cst_11 = arith.constant 1.280000e+02 : f32
    %27 = vector.broadcast %cst_11 : f32 to vector<16x1xf32>
    %28 = arith.divf %26, %27 : vector<16x1xf32>
    %29 = vector.broadcast %28 : vector<16x1xf32> to vector<16x128xf32>
    %30 = arith.subf %22, %29 : vector<16x128xf32>
    %31 = arith.mulf %30, %30 : vector<16x128xf32>
    %cst_12 = arith.constant dense<0.000000e+00> : vector<16xf32>
    %32 = vector.multi_reduction <add>, %31, %cst_12 [1] : vector<16x128xf32> to vector<16xf32>
    %33 = vector.shape_cast %32 : vector<16xf32> to vector<16x1xf32>
    %cst_13 = arith.constant 1.280000e+02 : f32
    %34 = vector.broadcast %cst_13 : f32 to vector<16x1xf32>
    %35 = arith.divf %33, %34 : vector<16x1xf32>
    %cst_14 = arith.constant 9.99999974E-6 : f32
    %36 = vector.broadcast %cst_14 : f32 to vector<16x1xf32>
    %37 = arith.addf %35, %36 : vector<16x1xf32>
    %38 = math.rsqrt %37 : vector<16x1xf32>
    %39 = vector.broadcast %38 : vector<16x1xf32> to vector<16x128xf32>
    %40 = arith.mulf %30, %39 : vector<16x128xf32>
    %41 = vector.broadcast %23 : vector<1x128xf32> to vector<16x128xf32>
    %42 = arith.mulf %40, %41 : vector<16x128xf32>
    %43 = vector.broadcast %24 : vector<1x128xf32> to vector<16x128xf32>
    %44 = arith.addf %42, %43 : vector<16x128xf32>
    %45 = arith.truncf %44 : vector<16x128xf32> to vector<16x128xbf16>
    %c0_15 = arith.constant 0 : index
    %c0_16 = arith.constant 0 : index
    %c0_17 = arith.constant 0 : index
    %46 = vector.load %arg5[%c0_15, %c0_16, %c0_17] : memref<2x128x128xbf16, #tpu.memory_space<vmem>>, vector<1x128x128xbf16>
    %47 = vector.shape_cast %46 : vector<1x128x128xbf16> to vector<128x128xbf16>
    %cst_18 = arith.constant dense<0.000000e+00> : vector<16x128xf32>
    %48 = tpu.matmul %45, %47, %cst_18 {dimension_numbers = #tpu.dot_dimension_numbers<[1], [0], [0], [1], [0, 0, 1, 1], [], []>} : vector<16x128xbf16>, vector<128x128xbf16>, vector<16x128xf32> -> vector<16x128xf32>
    %49 = vector.extract_strided_slice %0 {offsets = [3, 0], sizes = [1, 128], strides = [1, 1]} : vector<8x128xf32> to vector<1x128xf32>
    %50 = vector.broadcast %49 : vector<1x128xf32> to vector<16x128xf32>
    %51 = arith.addf %48, %50 : vector<16x128xf32>
    %cst_19 = arith.constant 0.000000e+00 : f32
    %52 = vector.broadcast %cst_19 : f32 to vector<16x128xf32>
    %53 = arith.maximumf %51, %52 : vector<16x128xf32>
    %54 = arith.truncf %53 : vector<16x128xf32> to vector<16x128xbf16>
    %c1 = arith.constant 1 : index
    %c0_20 = arith.constant 0 : index
    %c0_21 = arith.constant 0 : index
    %55 = vector.load %arg5[%c1, %c0_20, %c0_21] : memref<2x128x128xbf16, #tpu.memory_space<vmem>>, vector<1x128x128xbf16>
    %56 = vector.shape_cast %55 : vector<1x128x128xbf16> to vector<128x128xbf16>
    %cst_22 = arith.constant dense<0.000000e+00> : vector<16x128xf32>
    %57 = tpu.matmul %54, %56, %cst_22 {dimension_numbers = #tpu.dot_dimension_numbers<[1], [0], [0], [1], [0, 0, 1, 1], [], []>} : vector<16x128xbf16>, vector<128x128xbf16>, vector<16x128xf32> -> vector<16x128xf32>
    %58 = vector.extract_strided_slice %0 {offsets = [4, 0], sizes = [1, 128], strides = [1, 1]} : vector<8x128xf32> to vector<1x128xf32>
    %59 = vector.broadcast %58 : vector<1x128xf32> to vector<16x128xf32>
    %60 = arith.addf %57, %59 : vector<16x128xf32>
    %61 = vector.extract_strided_slice %0 {offsets = [5, 0], sizes = [1, 128], strides = [1, 1]} : vector<8x128xf32> to vector<1x128xf32>
    %62 = vector.extract_strided_slice %0 {offsets = [6, 0], sizes = [1, 128], strides = [1, 1]} : vector<8x128xf32> to vector<1x128xf32>
    %cst_23 = arith.constant dense<0.000000e+00> : vector<16xf32>
    %63 = vector.multi_reduction <add>, %60, %cst_23 [1] : vector<16x128xf32> to vector<16xf32>
    %64 = vector.shape_cast %63 : vector<16xf32> to vector<16x1xf32>
    %cst_24 = arith.constant 1.280000e+02 : f32
    %65 = vector.broadcast %cst_24 : f32 to vector<16x1xf32>
    %66 = arith.divf %64, %65 : vector<16x1xf32>
    %67 = vector.broadcast %66 : vector<16x1xf32> to vector<16x128xf32>
    %68 = arith.subf %60, %67 : vector<16x128xf32>
    %69 = arith.mulf %68, %68 : vector<16x128xf32>
    %cst_25 = arith.constant dense<0.000000e+00> : vector<16xf32>
    %70 = vector.multi_reduction <add>, %69, %cst_25 [1] : vector<16x128xf32> to vector<16xf32>
    %71 = vector.shape_cast %70 : vector<16xf32> to vector<16x1xf32>
    %cst_26 = arith.constant 1.280000e+02 : f32
    %72 = vector.broadcast %cst_26 : f32 to vector<16x1xf32>
    %73 = arith.divf %71, %72 : vector<16x1xf32>
    %cst_27 = arith.constant 9.99999974E-6 : f32
    %74 = vector.broadcast %cst_27 : f32 to vector<16x1xf32>
    %75 = arith.addf %73, %74 : vector<16x1xf32>
    %76 = math.rsqrt %75 : vector<16x1xf32>
    %77 = vector.broadcast %76 : vector<16x1xf32> to vector<16x128xf32>
    %78 = arith.mulf %68, %77 : vector<16x128xf32>
    %79 = vector.broadcast %61 : vector<1x128xf32> to vector<16x128xf32>
    %80 = arith.mulf %78, %79 : vector<16x128xf32>
    %81 = vector.broadcast %62 : vector<1x128xf32> to vector<16x128xf32>
    %82 = arith.addf %80, %81 : vector<16x128xf32>
    %c0_28 = arith.constant 0 : index
    %c0_29 = arith.constant 0 : index
    %c0_30 = arith.constant 0 : index
    %83 = vector.load %arg7[%c0_28, %c0_29, %c0_30] : memref<1x16x128xf32, #tpu.memory_space<vmem>>, vector<1x16x128xf32>
    %84 = vector.shape_cast %83 : vector<1x16x128xf32> to vector<16x128xf32>
    %85 = vector.shape_cast %82 : vector<16x128xf32> to vector<1x16x128xf32>
    tpu.vector_store %arg7[%c0_28, %c0_29, %c0_30], %85 {strides = array<i32>} : memref<1x16x128xf32, #tpu.memory_space<vmem>>, vector<1x16x128xf32>,
    return
  }
  func.func @transform_0(%arg0: i32, %arg1: i32) -> (i32, i32, i32) {
    %c0_i32 = arith.constant 0 : i32
    %c0_i32_0 = arith.constant 0 : i32
    return %arg1, %arg0, %c0_i32 : i32, i32, i32
  }
  func.func @transform_1(%arg0: i32, %arg1: i32) -> (i32, i32, i32) {
    %c1_i32 = arith.constant 1 : i32
    %0 = arith.addi %arg0, %c1_i32 : i32
    %c0_i32 = arith.constant 0 : i32
    %c0_i32_0 = arith.constant 0 : i32
    return %arg1, %0, %c0_i32 : i32, i32, i32
  }
  func.func @transform_2(%arg0: i32, %arg1: i32) -> (i32, i32) {
    %c0_i32 = arith.constant 0 : i32
    %c0_i32_0 = arith.constant 0 : i32
    %c0_i32_1 = arith.constant 0 : i32
    return %c0_i32, %c0_i32_0 : i32, i32
  }
  func.func @transform_3(%arg0: i32, %arg1: i32) -> (i32, i32, i32) {
    %c0_i32 = arith.constant 0 : i32
    %c0_i32_0 = arith.constant 0 : i32
    %c0_i32_1 = arith.constant 0 : i32
    %c0_i32_2 = arith.constant 0 : i32
    return %c0_i32, %c0_i32_0, %c0_i32_1 : i32, i32, i32
  }
  func.func @transform_4(%arg0: i32, %arg1: i32) -> (i32, i32) {
    %c0_i32 = arith.constant 0 : i32
    %c0_i32_0 = arith.constant 0 : i32
    %c0_i32_1 = arith.constant 0 : i32
    return %c0_i32, %c0_i32_0 : i32, i32
  }
  func.func @transform_5(%arg0: i32, %arg1: i32) -> (i32, i32, i32) {
    %c0_i32 = arith.constant 0 : i32
    %c0_i32_0 = arith.constant 0 : i32
    return %arg1, %arg0, %c0_i32 : i32, i32, i32
  }
}

</mosaic_0001>

<bundles_post_ra>
// kernel: tpu_custom_call.1
= control target key start
LH: loop header
LB: loop body
LE: loop exit
PB: predicated region body
PF: predicated region fallthrough
CT: control target
= control target key end

     0   :  { %s2492_s0 = inlined_call_operand.hbm [shape: f32[2,32,128], index: 0, kind: input, shape index: {}]   ;;  %s2493_s1 = inlined_call_operand.hbm [shape: f32[2,32,128], index: 1, kind: input, shape index: {}]   ;;  %s2494_s2 = inlined_call_operand.hbm [shape: bf16[1024,128], index: 2, kind: input, shape index: {}]   ;;  %s2495_s3 = inlined_call_operand.hbm [shape: bf16[2,128,128], index: 3, kind: input, shape index: {}]   ;;  %s2496_s4 = inlined_call_operand.hbm [shape: f32[8,128], index: 4, kind: input, shape index: {}]   ;;  %s2497_s5 = inlined_call_operand.vmem [shape: f32[2,15,128], index: 5, kind: output, shape index: {}]  }
   0x1   :  { %2499 = sst [smem:[#allocation14_spill]] %s2492_s0 }
   0x2   :  { %2500 = sst [smem:[#allocation15_spill]] %s2494_s2 }
   0x3   :  { %2501 = sst [smem:[#allocation16_spill]] %s2495_s3 }
   0x4   :  { %10 = vsyncpa [#allocation3], 0 }
   0x5   :  { %12 = vsyncpa [#allocation3 + $0x1], 0 }
   0x6   :  { %13 = vsyncpa [#allocation5], 0 }
   0x7   :  { %15 = vsyncpa [#allocation5 + $0x1], 0 }
   0x8   :  { %16 = vsyncpa [#allocation8], 0  ;;  %s2269_s18 = smov 0   ;;  %s2271_s19 = smov 0  }
   0x9   :  { %s2273_s20 = smov 0   ;;  %s2275_s21 = smov 0  }
   0xa   :  { %s2277_s22 = smov 0   ;;  %s2279_s23 = smov 0  }
   0xb LB: > { %s2498_s24 = sadd.s32 4294967295, %s2229_s23   ;;  %p56_p0 = scmp.ne.s32.totalorder %s2213_s19, %s2209_s18  ;;  %s2229_s23 = sphi %s2279_s23, %s22_s23   ;;  %s2225_s22 = sphi %s2277_s22, %s2516_s22   ;;  %s2221_s21 = sphi %s2275_s21, %s2515_s21   ;;  %s2217_s20 = sphi %s2273_s20, %s2514_s20   ;;  %s2213_s19 = sphi %s2271_s19, %s2513_s19   ;;  %s2209_s18 = sphi %s2269_s18, %s2512_s18  }
   0xc   : > { %p2301_p1 = scmp.eq.s32.totalorder %s2498_s24, 0  ;;  %p1487_p2 = scmp.ge.s32.totalorder %s2229_s23, 1 }
   0xd   : > { %p188_p3 = scmp.lt.s32.totalorder %s2229_s23, 3  ;;  %s2504_s2 = sld [smem:[#allocation15_spill]] }
   0xe   : > { %p2309_p4 = por %p2301_p1, %p56_p0  ;;  %s2231_s6 = smov [#allocation6]  }
   0xf   : > { %p2316_p5 = pnand %p1487_p2, %p188_p3  ;;  %s201_s7 = sshll.u32 %s2231_s6, 4  ;;  %s202_s7 = int_to_ptr.vmem [resolvable:$true] %s201_s7 }
  0x10   : > { %s2507_s3 = sld [smem:[#allocation16_spill]]  ;;  %s2232_s12 = smov 64  }
  0x11   : > { %p1927_p6 = pneg %p2316_p5  ;;  %s2233_s13 = smov 4  }
  0x12   : > { %s2234_s14 = smov [#allocation7]   ;;  %s228_s18 = sshll.u32 %s2496_s4, 4  ;;  %s229_s18 = int_to_ptr.hbm [resolvable:$true] %s228_s18 }
  0x13   : > { %s199_s29 = sshll.u32 %s2504_s2, 4  ;;  %p2324_p7 = pnand %p1927_p6, %p2301_p1  ;;  %s200_s29 = int_to_ptr.hbm [resolvable:$true] %s199_s29 }
  0x14   : > { %s215_s15 = sshll.u32 %s2234_s14, 4  ;;  %s2235_s27 = smov [#allocation9]   ;;  %s216_s15 = int_to_ptr.vmem [resolvable:$true] %s215_s15 }
  0x15   : > { %1930 = dma.hbm_to_vmem [thread:$0]  (!%p2324_p7), %s200_s29, 8192, %s202_s7, [#allocation5], %s2232_s12, %s2232_s12, %s2233_s13  }
  0x16   : > { %s213_s11 = sshll.u32 %s2507_s3, 4  ;;  %s230_s28 = sshll.u32 %s2235_s27, 4  ;;  %s214_s11 = int_to_ptr.hbm [resolvable:$true] %s213_s11  ;;  %s231_s28 = int_to_ptr.vmem [resolvable:$true] %s230_s28 }
  0x17   : > { %1933 = dma.hbm_to_vmem [thread:$0]  (!%p2324_p7), %s214_s11, 2048, %s216_s15, [#allocation8], %s2232_s12, %s2232_s12, %s2233_s13  }
  0x18   : > { %1936 = dma.hbm_to_vmem [thread:$0]  (!%p2324_p7), %s229_s18, 128, %s231_s28, [#allocation8]  }
  0x19   : > { %s31_s29 = sadd.s32 1, %s2225_s22  ;;  %s43_s6 = sadd.s32 1, %s2217_s20 }
  0x1a   : > { %p32_p8 = scmp.ge.s32.totalorder %s31_s29, 2  ;;  %p50_p9 = scmp.ne.s32.totalorder %s2217_s20, %s2213_s19 }
  0x1b   : > { %p51_p10 = scmp.eq.s32.totalorder %s2229_s23, 0  ;;  %p1947_p12 = scmp.lt.s32.totalorder %s2229_s23, 2 }
  0x1c   : > { %s2518_s29 = smov (%p32_p8, %s31_s29), 0  ;;  %s241_s10 = sand.u32 1, %s2217_s20  }
  0x1d   : > { %p2347_p11 = por %p51_p10, %p50_p9  ;;  %s38_s9 = ssub.s32 %s2225_s22, %s2518_s29 }
  0x1e   : > { %p41_p13 = scmp.eq.s32.totalorder %s38_s9, 0  ;;  %s1492_s8 = sshll.u32 %s241_s10, 4 }
  0x1f   : > { %s1828_s11 = sshll.u32 %s2225_s22, 5  ;;  %s2509_s0 = sld [smem:[#allocation14_spill]] }
  0x20   : > { %s2357_s12 = scalar_select %p41_p13, %s2217_s20, %s43_s6  }
  0x21   : > { %s245_s17 = scalar_lea.vmem [#allocation2], %s1492_s8  ;;  %p2366_p0 = pnand %p1947_p12, %p2347_p11 }
  0x22   : > { %s255_s18 = sshll.u32 %s245_s17, 4  ;;  %s1387_s6 = scalar_lea.hbm %s2493_s1, %s1828_s11  ;;  %s256_s18 = int_to_ptr.vmem [resolvable:$true] %s255_s18 }
  0x23   : > { %s242_s13 = scalar_lea.sflag [#allocation3], %s241_s10  ;;  %s2236_s14 = smov 128  }
  0x24   : > { %s1388_s17 = scalar_lea.hbm %s1387_s6, 16  ;;  %s269_s24 = scalar_lea.vmem [#allocation4], %s1492_s8 }
  0x25   : > { %s252_s15 = scalar_lea.hbm %s2509_s0, %s1828_s11  ;;  %s280_s0 = sshll.u32 %s269_s24, 4  ;;  %s281_s0 = int_to_ptr.vmem [resolvable:$true] %s280_s0 }
  0x26   : > { %s253_s16 = sshll.u32 %s252_s15, 4  ;;  %s2237_s15 = smov 8   ;;  %s254_s16 = int_to_ptr.hbm [resolvable:$true] %s253_s16 }
  0x27   : > { %1940 = dma.hbm_to_vmem [thread:$0]  (!%p2366_p0), %s254_s16, 256, %s256_s18, %s242_s13, %s2236_s14, %s2236_s14, %s2237_s15  }
  0x28   : > { %s278_s7 = sshll.u32 %s1388_s17, 4  ;;  %s265_s2 = sand.u32 1, %s2229_s23   ;;  %s279_s7 = int_to_ptr.hbm [resolvable:$true] %s278_s7 }
  0x29   : > { %s266_s3 = scalar_lea.sflag [#allocation5], %s265_s2  ;;  %292 = sbr.rel (%p2316_p5) target bundleno = 1078 (0x436), region = 40 }
  0x2a   : > { %1943 = dma.hbm_to_vmem [thread:$0]  (!%p2366_p0), %s279_s7, 256, %s281_s0, %s266_s3, %s2236_s14, %s2236_s14, %s2237_s15  }
  0x2b   : > { %s294_s10 = sand.u32 (!%p2316_p5), 1, %s2213_s19  }
  0x2c   : > { %s2381_s11 = sshll.u32 (!%p2316_p5), %s294_s10, 4  ;;  %s295_s16 = scalar_lea.sflag (!%p2316_p5), [#allocation3], %s294_s10 }
  0x2d   : > { %s298_s18 = scalar_lea.vmem (!%p2316_p5), [#allocation2], %s2381_s11 }
  0x2e   : > { %2192 = dma.done.wait (%p2309_p4), %s295_s16, 256  }
  0x2f   : > { %2194 = vsyncadd (%p2309_p4), %s295_s16, 4294967040  ;;  %s2511_s2 = sadd.s32 4294967295, %s2229_s23   ;;  %s308_s24 = scalar_lea.vmem [#allocation4], %s2381_s11 }
  0x30   : > { %s304_s0 = sand.u32 1, %s2511_s2  }
  0x31   : > { %s305_s3 = scalar_lea.sflag [#allocation5], %s304_s0 }
  0x32   : > { %2196 = dma.done.wait (%p2309_p4), %s305_s3, 256  }
  0x33   : > { %2198 = vsyncadd (%p2309_p4), %s305_s3, 4294967040 }
  0x34   : > { %2200 = dma.done.wait (%p2301_p1), [#allocation5], 8192  }
  0x35   : > { %2202 = vsyncadd (%p2301_p1), [#allocation5], 4294959104 }
  0x36   : > { %2204 = dma.done.wait (%p2301_p1), [#allocation8], 2176  }
  0x37   : > { %2206 = vsyncadd (%p2301_p1), [#allocation8], 4294965120  ;;  %v1838_v0 = vld [vmem:[#allocation6 + $0x38] sm:$0xff]  ;;  %v1837_v4 = vld [vmem:[#allocation6 + $0x30] sm:$0xff]  ;;  %vm388_vm0 = vcmask 1045504   ;;  %vm396_vm1 = vcmask 1044480  }
  0x38   : > { %v1846_v1 = vld [vmem:[#allocation6 + $0x78] sm:$0xff]  ;;  %957 = vmatpush.bf16.msra.mxu0 %v1838_v0  ;;  %v1845_v5 = vld [vmem:[#allocation6 + $0x70] sm:$0xff]  ;;  %v1836_v8 = vld [vmem:[#allocation6 + $0x28] sm:$0xff]  ;;  %vm380_vm2 = vcmask 1046528   ;;  %vm404_vm3 = vcmask 1043456   ;;  %vm412_vm4 = vcmask 1042432  }
  0x39   : > { %v1854_v2 = vld [vmem:[#allocation6 + $0xb8] sm:$0xff]  ;;  %971 = vmatpush.bf16.msra.mxu1 %v1846_v1  ;;  %v1853_v6 = vld [vmem:[#allocation6 + $0xb0] sm:$0xff]  ;;  %v1844_v9 = vld [vmem:[#allocation6 + $0x68] sm:$0xff]  ;;  %vm420_vm5 = vcmask 1041408   ;;  %vm428_vm6 = vcmask 1040384   ;;  %p364_p1 = scmp.lt.s32.totalorder %s2221_s21, 1 }
  0x3a   : > { %v1862_v3 = vld [vmem:[#allocation6 + $0xf8] sm:$0xff]  ;;  %985 = vmatpush.bf16.msra.mxu2 %v1854_v2  ;;  %v1861_v7 = vld [vmem:[#allocation6 + $0xf0] sm:$0xff]  ;;  %v1852_v10 = vld [vmem:[#allocation6 + $0xa8] sm:$0xff] }
  0x3b   : > { %999 = vmatpush.bf16.msra.mxu3 %v1862_v3  ;;  %v1860_v11 = vld [vmem:[#allocation6 + $0xe8] sm:$0xff]  ;;  %v1835_v12 = vld [vmem:[#allocation6 + $0x20] sm:$0xff]  ;;  %v1834_v16 = vld [vmem:[#allocation6 + $0x18] sm:$0xff]  ;;  %s2520_s21 = smov (!%p364_p1, %s2221_s21), 1 }
  0x3c   : > { %958 = vmatpush.bf16.msra.mxu0 %v1837_v4  ;;  %v1843_v13 = vld [vmem:[#allocation6 + $0x60] sm:$0xff]  ;;  %v1842_v17 = vld [vmem:[#allocation6 + $0x58] sm:$0xff]  ;;  %v1833_v20 = vld [vmem:[#allocation6 + $0x10] sm:$0xff]  ;;  %s1830_s25 = sshll.u32 %s2520_s21, 4 }
  0x3d   : > { %972 = vmatpush.bf16.msra.mxu1 %v1845_v5  ;;  %v1851_v14 = vld [vmem:[#allocation6 + $0xa0] sm:$0xff]  ;;  %v1850_v18 = vld [vmem:[#allocation6 + $0x98] sm:$0xff]  ;;  %v1841_v21 = vld [vmem:[#allocation6 + $0x50] sm:$0xff]  ;;  %s371_s8 = scalar_lea.vmem %s2497_s5, %s1830_s25 }
  0x3e   : > { %986 = vmatpush.bf16.msra.mxu2 %v1853_v6  ;;  %v1859_v15 = vld [vmem:[#allocation6 + $0xe0] sm:$0xff]  ;;  %v1858_v19 = vld [vmem:[#allocation6 + $0xd8] sm:$0xff]  ;;  %v1849_v22 = vld [vmem:[#allocation6 + $0x90] sm:$0xff] }
  0x3f   : > { %1000 = vmatpush.bf16.msra.mxu3 %v1861_v7  ;;  %v1857_v23 = vld [vmem:[#allocation6 + $0xd0] sm:$0xff]  ;;  %v2409_v25 = vld [vmem:[%s298_s18 + $0x8] sm:$0xff]  ;;  %v1831_v40 = vld [vmem:[#allocation6] sm:$0xff] }
  0x40   : > { %959 = vmatpush.bf16.msra.mxu0 %v1836_v8  ;;  %v2405_v24 = vld [vmem:[%s298_s18] sm:$0xff]  ;;  %v1832_v27 = vld [vmem:[#allocation6 + $0x8] sm:$0xff]  ;;  %v390_v32 = vrot.slane %v2409_v25, 2  ;;  %v398_v35 = vrot.slane %v2409_v25, 3  ;;  %v382_v38 = vrot.slane %v2409_v25, 1  ;;  %v1870_v46 = vld [vmem:[#allocation6 + $0x138] sm:$0xff] }
  0x41   : > { %973 = vmatpush.bf16.msra.mxu1 %v1844_v9  ;;  %v2413_v26 = vld [vmem:[%s308_s24] sm:$0xff]  ;;  %v1840_v28 = vld [vmem:[#allocation6 + $0x48] sm:$0xff]  ;;  %v389_v29 = vrot.slane %v2405_v24, 2  ;;  %v397_v34 = vrot.slane %v2405_v24, 3  ;;  %v381_v37 = vrot.slane %v2405_v24, 1  ;;  %v1878_v47 = vld [vmem:[#allocation6 + $0x178] sm:$0xff]  ;;  %v436_v55 = vpack.c.bf16 %v2409_v25, %v2405_v24 }
  0x42   : > { %987 = vmatpush.bf16.msra.mxu2 %v1852_v10  ;;  %v1848_v30 = vld [vmem:[#allocation6 + $0x88] sm:$0xff]  ;;  %v392_v33 = vrot.slane %v2413_v26, 2  ;;  %v400_v36 = vrot.slane %v2413_v26, 3  ;;  %v384_v39 = vrot.slane %v2413_v26, 1  ;;  %v1839_v41 = vld [vmem:[#allocation6 + $0x40] sm:$0xff]  ;;  %v1886_v52 = vld [vmem:[#allocation6 + $0x1b8] sm:$0xff] }
  0x43   : > { %1001 = vmatpush.bf16.msra.mxu3 %v1860_v11  ;;  %v1856_v31 = vld [vmem:[#allocation6 + $0xc8] sm:$0xff]  ;;  %v1847_v42 = vld [vmem:[#allocation6 + $0x80] sm:$0xff]  ;;  %v391_v44 = vsel %vm388_vm0, %v389_v29, %v390_v32  ;;  %v399_v48 = vsel %vm396_vm1, %v397_v34, %v398_v35  ;;  %v383_v50 = vsel %vm380_vm2, %v381_v37, %v382_v38  ;;  %v1894_v53 = vld [vmem:[#allocation6 + $0x1f8] sm:$0xff]  ;;  %v424_v29 = vrot.slane %v2413_v26, 6 }
  0x44   : > { %960 = vmatpush.bf16.msra.mxu0 %v1835_v12  ;;  %v1855_v43 = vld [vmem:[#allocation6 + $0xc0] sm:$0xff]  ;;  %v393_v45 = vsel %vm388_vm0, %v390_v32, %v392_v33  ;;  %v401_v49 = vsel %vm396_vm1, %v398_v35, %v400_v36  ;;  %v385_v51 = vsel %vm380_vm2, %v382_v38, %v384_v39  ;;  %v1869_v58 = vld [vmem:[#allocation6 + $0x130] sm:$0xff]  ;;  %v1868_v62 = vld [vmem:[#allocation6 + $0x128] sm:$0xff]  ;;  %v432_v32 = vrot.slane %v2413_v26, 7 }
  0x45   : > { %974 = vmatpush.bf16.msra.mxu1 %v1843_v13  ;;  %v438_v54 = vpack.c.bf16 %v393_v45, %v391_v44  ;;  %v439_v56 = vpack.c.bf16 %v401_v49, %v399_v48  ;;  %v437_v57 = vpack.c.bf16 %v385_v51, %v383_v50  ;;  %v1877_v59 = vld [vmem:[#allocation6 + $0x170] sm:$0xff]  ;;  %v1876_v63 = vld [vmem:[#allocation6 + $0x168] sm:$0xff]  ;;  %v1867_v2 = vld [vmem:[#allocation6 + $0x120] sm:$0xff] }
  0x46   : > { %988 = vmatpush.bf16.msra.mxu2 %v1851_v14  ;;  %v1885_v60 = vld [vmem:[#allocation6 + $0x1b0] sm:$0xff]  ;;  %v1884_v0 = vld [vmem:[#allocation6 + $0x1a8] sm:$0xff]  ;;  %v1875_v3 = vld [vmem:[#allocation6 + $0x160] sm:$0xff]  ;;  %v405_v14 = vrot.slane %v2405_v24, 4 }
  0x47   : > { %1002 = vmatpush.bf16.msra.mxu3 %v1859_v15  ;;  %v1893_v61 = vld [vmem:[#allocation6 + $0x1f0] sm:$0xff]  ;;  %v1892_v1 = vld [vmem:[#allocation6 + $0x1e8] sm:$0xff]  ;;  %v1883_v4 = vld [vmem:[#allocation6 + $0x1a0] sm:$0xff]  ;;  %v406_v15 = vrot.slane %v2409_v25, 4 }
  0x48   : > { %961 = vmatpush.bf16.msra.mxu0 %v1834_v16  ;;  %v1891_v5 = vld [vmem:[#allocation6 + $0x1e0] sm:$0xff]  ;;  %v1866_v6 = vld [vmem:[#allocation6 + $0x118] sm:$0xff]  ;;  %v1865_v10 = vld [vmem:[#allocation6 + $0x110] sm:$0xff]  ;;  %v408_v16 = vrot.slane %v2413_v26, 4 }
  0x49   : > { %975 = vmatpush.bf16.msra.mxu1 %v1842_v17  ;;  %v1874_v7 = vld [vmem:[#allocation6 + $0x158] sm:$0xff]  ;;  %v1873_v11 = vld [vmem:[#allocation6 + $0x150] sm:$0xff]  ;;  %v413_v17 = vrot.slane %v2405_v24, 5  ;;  %v407_v33 = vsel %vm404_vm3, %v405_v14, %v406_v15  ;;  %v1863_v35 = vld [vmem:[#allocation6 + $0x100] sm:$0xff] }
  0x4a   : > { %989 = vmatpush.bf16.msra.mxu2 %v1850_v18  ;;  %v1882_v8 = vld [vmem:[#allocation6 + $0x198] sm:$0xff]  ;;  %v1881_v12 = vld [vmem:[#allocation6 + $0x190] sm:$0xff]  ;;  %v414_v18 = vrot.slane %v2409_v25, 5  ;;  %v409_v34 = vsel %vm404_vm3, %v406_v15, %v408_v16  ;;  %v1871_v36 = vld [vmem:[#allocation6 + $0x140] sm:$0xff] }
  0x4b   : > { %1003 = vmatpush.bf16.msra.mxu3 %v1858_v19  ;;  %v1890_v9 = vld [vmem:[#allocation6 + $0x1d8] sm:$0xff]  ;;  %v1889_v13 = vld [vmem:[#allocation6 + $0x1d0] sm:$0xff]  ;;  %v1864_v19 = vld [vmem:[#allocation6 + $0x108] sm:$0xff] }
  0x4c   : > { %962 = vmatpush.bf16.msra.mxu0 %v1833_v20  ;;  %v1872_v20 = vld [vmem:[#allocation6 + $0x148] sm:$0xff]  ;;  %v415_v37 = vsel %vm412_vm4, %v413_v17, %v414_v18 }
  0x4d   : > { %976 = vmatpush.bf16.msra.mxu1 %v1841_v21  ;;  %v416_v21 = vrot.slane %v2413_v26, 5 }
  0x4e   : > { %990 = vmatpush.bf16.msra.mxu2 %v1849_v22  ;;  %v421_v22 = vrot.slane %v2405_v24, 6 }
  0x4f   : > { %1004 = vmatpush.bf16.msra.mxu3 %v1857_v23  ;;  %v422_v23 = vrot.slane %v2409_v25, 6  ;;  %v417_v38 = vsel %vm412_vm4, %v414_v18, %v416_v21  ;;  %v2238_v18 = vmov 128.0  }
  0x50   : > { %963 = vmatpush.bf16.msra.mxu0 %v1832_v27  ;;  %v1880_v27 = vld [vmem:[#allocation6 + $0x188] sm:$0xff]  ;;  %2007 = vrcp.f32 %v2238_v18 }
  0x51   : > { %977 = vmatpush.bf16.msra.mxu1 %v1840_v28  ;;  %v1888_v28 = vld [vmem:[#allocation6 + $0x1c8] sm:$0xff]  ;;  %v423_v39 = vsel %vm420_vm5, %v421_v22, %v422_v23  ;;  %v425_v26 = vsel %vm420_vm5, %v422_v23, %v424_v29 }
  0x52   : > { %991 = vmatpush.bf16.msra.mxu2 %v1848_v30  ;;  %v429_v30 = vrot.slane %v2405_v24, 7  ;;  %v1879_v24 = vld [vmem:[#allocation6 + $0x180] sm:$0xff]  ;;  %v442_v44 = vpack.c.bf16 %v425_v26, %v423_v39  ;;  %v1896_v26 = vld [vmem:[#allocation7 + $0x8] sm:$0xff] }
  0x53   : > { %1005 = vmatpush.bf16.msra.mxu3 %v1856_v31  ;;  %v430_v31 = vrot.slane %v2409_v25, 7  ;;  %v1887_v25 = vld [vmem:[#allocation6 + $0x1c0] sm:$0xff] }
  0x54   : > { %964 = vmatpush.bf16.msra.mxu0 %v1831_v40  ;;  %v1899_v39 = vld [vmem:[#allocation7 + $0x20] sm:$0xff] }
  0x55   : > { %978 = vmatpush.bf16.msra.mxu1 %v1839_v41  ;;  %v431_v40 = vsel %vm428_vm6, %v429_v30, %v430_v31  ;;  %v433_v41 = vsel %vm428_vm6, %v430_v31, %v432_v32 }
  0x56   : > { %992 = vmatpush.bf16.msra.mxu2 %v1847_v42  ;;  %v440_v42 = vpack.c.bf16 %v409_v34, %v407_v33  ;;  %v443_v45 = vpack.c.bf16 %v433_v41, %v431_v40  ;;  %v1895_v41 = vld [vmem:[#allocation7] sm:$0xff] }
  0x57   : > { %1006 = vmatpush.bf16.msra.mxu3 %v1855_v43  ;;  %965 = vmatmul.bf16.vlgmr.msra.gmra.mxu0 %v436_v55  ;;  %v441_v43 = vpack.c.bf16 %v417_v38, %v415_v37  ;;  %v1901_v37 = vld [vmem:[#allocation7 + $0x30] sm:$0xff]  ;;  %v1900_v38 = vld [vmem:[#allocation7 + $0x28] sm:$0xff] }
  0x58   : > { %1013 = vmatpush.bf16.msrb.mxu0 %v1870_v46  ;;  %979 = vmatmul.bf16.vlgmr.msra.gmra.mxu1 %v437_v57  ;;  %v2450_v46 = vld [vmem:[#allocation9] sm:$0xff] }
  0x59   : > { %1027 = vmatpush.bf16.msrb.mxu1 %v1878_v47  ;;  %993 = vmatmul.bf16.vlgmr.msra.gmra.mxu2 %v438_v54  ;;  %v572_v48 = vperm.slane %v2450_v46, 0 }
  0x5a   : > { %1041 = vmatpush.bf16.msrb.mxu2 %v1886_v52  ;;  %1007 = vmatmul.bf16.vlgmr.msra.gmra.mxu3 %v439_v56 }
  0x5b   : > { %1055 = vmatpush.bf16.msrb.mxu3 %v1894_v53 }
  0x5c   : > { %1014 = vmatpush.bf16.msrb.mxu0 %v1869_v58 }
  0x5d   : > { %1028 = vmatpush.bf16.msrb.mxu1 %v1877_v59 }
  0x5e   : > { %1042 = vmatpush.bf16.msrb.mxu2 %v1885_v60 }
  0x5f   : > { %1056 = vmatpush.bf16.msrb.mxu3 %v1893_v61 }
  0x60   : > { %1015 = vmatpush.bf16.msrb.mxu0 %v1868_v62 }
  0x61   : > { %1029 = vmatpush.bf16.msrb.mxu1 %v1876_v63 }
  0x62   : > { %1043 = vmatpush.bf16.msrb.mxu2 %v1884_v0 }
  0x63   : > { %1057 = vmatpush.bf16.msrb.mxu3 %v1892_v1 }
  0x64   : > { %1016 = vmatpush.bf16.msrb.mxu0 %v1867_v2 }
  0x65   : > { %1030 = vmatpush.bf16.msrb.mxu1 %v1875_v3 }
  0x66   : > { %1044 = vmatpush.bf16.msrb.mxu2 %v1883_v4 }
  0x67   : > { %1058 = vmatpush.bf16.msrb.mxu3 %v1891_v5 }
  0x68   : > { %1017 = vmatpush.bf16.msrb.mxu0 %v1866_v6 }
  0x69   : > { %1031 = vmatpush.bf16.msrb.mxu1 %v1874_v7 }
  0x6a   : > { %1045 = vmatpush.bf16.msrb.mxu2 %v1882_v8 }
  0x6b   : > { %1059 = vmatpush.bf16.msrb.mxu3 %v1890_v9 }
  0x6c   : > { %1018 = vmatpush.bf16.msrb.mxu0 %v1865_v10 }
  0x6d   : > { %1032 = vmatpush.bf16.msrb.mxu1 %v1873_v11 }
  0x6e   : > { %1046 = vmatpush.bf16.msrb.mxu2 %v1881_v12 }
  0x6f   : > { %1060 = vmatpush.bf16.msrb.mxu3 %v1889_v13 }
  0x70   : > { %1019 = vmatpush.bf16.msrb.mxu0 %v1864_v19  ;;  %v2008_v19 = vpop.eup %2007 }
  0x71   : > { %1033 = vmatpush.bf16.msrb.mxu1 %v1872_v20  ;;  %v1076_v20 = vmul.f32 128.0, %v2008_v19  ;;  %vm1080_vm7 = vweird.f32 %v2008_v19 }
  0x72   : > { %1047 = vmatpush.bf16.msrb.mxu2 %v1880_v27 }
  0x73   : > { %1061 = vmatpush.bf16.msrb.mxu3 %v1888_v28  ;;  %v1077_v21 = vsub.f32 1.0, %v1076_v20 }
  0x74   : > { %1020 = vmatpush.bf16.msrb.mxu0 %v1863_v35 }
  0x75   : > { %1034 = vmatpush.bf16.msrb.mxu1 %v1871_v36  ;;  %v1078_v22 = vmul.f32 %v2008_v19, %v1077_v21  ;;  %v1902_v36 = vld [vmem:[#allocation7 + $0x38] sm:$0xff] }
  0x76   : > { %1048 = vmatpush.bf16.msrb.mxu2 %v1879_v24  ;;  %v1898_v24 = vld [vmem:[#allocation7 + $0x18] sm:$0xff] }
  0x77   : > { %1062 = vmatpush.bf16.msrb.mxu3 %v1887_v25  ;;  %1021 = vmatmul.bf16.vlgmr.msrb.gmra.mxu0 %v440_v42  ;;  %v1079_v23 = vadd.f32 %v2008_v19, %v1078_v22  ;;  %v1897_v25 = vld [vmem:[#allocation7 + $0x10] sm:$0xff] }
  0x78   : > { %1035 = vmatmul.bf16.vlgmr.msrb.gmra.mxu1 %v441_v43  ;;  %1190 = vmatpush.bf16.msra.mxu0 %v1902_v36 }
  0x79   : > { %1049 = vmatmul.bf16.vlgmr.msrb.gmra.mxu2 %v442_v44  ;;  %v2453_v27 = vsel %vm1080_vm7, %v2008_v19, %v1079_v23  ;;  %v1910_v44 = vld [vmem:[#allocation7 + $0x78] sm:$0xff]  ;;  %v1224_v23 = vperm.slane %v2450_v46, 4 }
  0x7a   : > { %1063 = vmatmul.bf16.vlgmr.msrb.gmra.mxu3 %v443_v45  ;;  %1273 = vmatpush.bf16.msra.mxu1 %v1910_v44 }
  0x7c   : > { %1191 = vmatpush.bf16.msra.mxu0 %v1901_v37 }
  0x80   : > { %1192 = vmatpush.bf16.msra.mxu0 %v1900_v38 }
  0x84   : > { %1193 = vmatpush.bf16.msra.mxu0 %v1899_v39 }
  0x88   : > { %1194 = vmatpush.bf16.msra.mxu0 %v1898_v24 }
  0x8c   : > { %1195 = vmatpush.bf16.msra.mxu0 %v1897_v25 }
  0x90   : > { %1196 = vmatpush.bf16.msra.mxu0 %v1896_v26 }
  0x94   : > { %1197 = vmatpush.bf16.msra.mxu0 %v1895_v41 }
  0xd4   : > { %v966_v47 = vpop.f32.mrf.mxu0 }
  0xd5   : > { %v980_v49 = vpop.f32.mrf.mxu1  ;;  %v967_v50 = vadd.f32 %v966_v47, %v572_v48 }
  0xd7   : > { %v981_v53 = vadd.f32 %v980_v49, %v967_v50 }
  0xdc   : > { %v994_v51 = vpop.f32.mrf.mxu2  ;;  %v968_v54 = vpop.f32.mrf.mxu0 }
  0xdd   : > { %v1008_v52 = vpop.f32.mrf.mxu3  ;;  %v982_v55 = vpop.f32.mrf.mxu1  ;;  %v995_v56 = vadd.f32 %v994_v51, %v981_v53  ;;  %v969_v57 = vadd.f32 %v968_v54, %v572_v48  ;;  %v1909_v48 = vld [vmem:[#allocation7 + $0x70] sm:$0xff] }
  0xde   : > { %1274 = vmatpush.bf16.msra.mxu1 %v1909_v48 }
  0xdf   : > { %v1009_v60 = vadd.f32 %v1008_v52, %v995_v56  ;;  %v983_v61 = vadd.f32 %v982_v55, %v969_v57  ;;  %v1908_v52 = vld [vmem:[#allocation7 + $0x68] sm:$0xff]  ;;  %v1907_v55 = vld [vmem:[#allocation7 + $0x60] sm:$0xff] }
  0xe2   : > { %1275 = vmatpush.bf16.msra.mxu1 %v1908_v52  ;;  %v1327_v52 = vperm.slane %v2450_v46, 5 }
  0xe4   : > { %v996_v58 = vpop.f32.mrf.mxu2 }
  0xe5   : > { %v1010_v59 = vpop.f32.mrf.mxu3  ;;  %v997_v1 = vadd.f32 %v996_v58, %v983_v61 }
  0xe6   : > { %1276 = vmatpush.bf16.msra.mxu1 %v1907_v55 }
  0xe7   : > { %v1011_v5 = vadd.f32 %v1010_v59, %v997_v1  ;;  %v1118_v1 = vperm.slane %v2450_v46, 1 }
  0xf4   : > { %v1022_v62 = vpop.f32.mrf.mxu0 }
  0xf5   : > { %v1023_v63 = vadd.f32 %v1022_v62, %v1009_v60  ;;  %v1036_v0 = vpop.f32.mrf.mxu1 }
  0xf7   : > { %v1037_v2 = vadd.f32 %v1036_v0, %v1023_v63 }
  0xfc   : > { %v1050_v3 = vpop.f32.mrf.mxu2  ;;  %v1024_v7 = vpop.f32.mrf.mxu0 }
  0xfd   : > { %v1064_v4 = vpop.f32.mrf.mxu3  ;;  %v1051_v6 = vadd.f32 %v1050_v3, %v1037_v2  ;;  %v1025_v9 = vadd.f32 %v1024_v7, %v1011_v5  ;;  %v1038_v11 = vpop.f32.mrf.mxu1 }
  0xff   : > { %v1065_v8 = vadd.f32 %v1064_v4, %v1051_v6  ;;  %v1039_v12 = vadd.f32 %v1038_v11, %v1025_v9  ;;  %v1121_v6 = vperm.slane %v2450_v46, 2  ;;  %v1906_v11 = vld [vmem:[#allocation7 + $0x58] sm:$0xff] }
 0x100   : > { %1277 = vmatpush.bf16.msra.mxu1 %v1906_v11 }
 0x101   : > { %v1069_v10 = vmax.f32 %v1065_v8, 0.0 }
 0x103   : > { %1071 = vadd.xlane.f32.xlu0 %v1069_v10 }
 0x104   : > { %v1052_v13 = vpop.f32.mrf.mxu2 }
 0x105   : > { %v1053_v14 = vadd.f32 %v1052_v13, %v1039_v12  ;;  %v1066_v15 = vpop.f32.mrf.mxu3  ;;  %v1905_v12 = vld [vmem:[#allocation7 + $0x50] sm:$0xff]  ;;  %v1904_v13 = vld [vmem:[#allocation7 + $0x48] sm:$0xff] }
 0x106   : > { %1278 = vmatpush.bf16.msra.mxu1 %v1905_v12 }
 0x107   : > { %v1067_v16 = vadd.f32 %v1066_v15, %v1053_v14  ;;  %v1903_v14 = vld [vmem:[#allocation7 + $0x40] sm:$0xff] }
 0x109   : > { %v1070_v17 = vmax.f32 %v1067_v16, 0.0  ;;  %v1141_v16 = vperm.slane %v2450_v46, 3 }
 0x10a   : > { %1279 = vmatpush.bf16.msra.mxu1 %v1904_v13 }
 0x10b   : > { %1073 = vadd.xlane.f32.xlu0 %v1070_v17 }
 0x10e   : > { %1280 = vmatpush.bf16.msra.mxu1 %v1903_v14 }
 0x176   : > { %v1072_v28 = vpop.xlane.xlu0 %1071 }
 0x177   : > { %v1082_v29 = vmul.f32 %v2453_v27, %v1072_v28 }
 0x179   : > { %v1084_v30 = vsub.f32 %v1069_v10, %v1082_v29 }
 0x17b   : > { %v1086_v31 = vmul.f32 %v1084_v30, %v1084_v30 }
 0x17d   : > { %1088 = vadd.xlane.f32.xlu1 %v1086_v31 }
 0x17e   : > { %v1074_v32 = vpop.xlane.xlu0 %1073 }
 0x17f   : > { %v1083_v33 = vmul.f32 %v2453_v27, %v1074_v32 }
 0x181   : > { %v1085_v34 = vsub.f32 %v1070_v17, %v1083_v33 }
 0x183   : > { %v1087_v35 = vmul.f32 %v1085_v34, %v1085_v34 }
 0x185   : > { %1090 = vadd.xlane.f32.xlu1 %v1087_v35 }
 0x1f0   : > { %v1089_v40 = vpop.xlane.xlu1 %1088 }
 0x1f1   : > { %v1092_v42 = vmul.f32 %v1089_v40, %v2453_v27 }
 0x1f3   : > { %v1094_v43 = vadd.f32 1e-05, %v1092_v42 }
 0x1f5   : > { %2009 = vrsqrt.f32 %v1094_v43  ;;  %vm1102_vm9 = vweird.f32 %v1094_v43 }
 0x1f8   : > { %v1091_v45 = vpop.xlane.xlu1 %1090 }
 0x1f9   : > { %v1093_v47 = vmul.f32 %v1091_v45, %v2453_v27 }
 0x1fb   : > { %v2010_v49 = vpop.eup %2009  ;;  %v1095_v50 = vadd.f32 1e-05, %v1093_v47 }
 0x1fc   : > { %v1097_v51 = vmul.f32 %v2010_v49, %v1094_v43  ;;  %vm1103_vm8 = vweird.f32 %v2010_v49 }
 0x1fd   : > { %2011 = vrsqrt.f32 %v1095_v50  ;;  %vm1104_vm10 = vmor %vm1102_vm9, %vm1103_vm8  ;;  %vm1112_vm12 = vweird.f32 %v1095_v50 }
 0x1fe   : > { %v1098_v53 = vmul.f32 %v2010_v49, %v1097_v51 }
 0x200   : > { %v1099_v54 = vmul.f32 0.5, %v1098_v53 }
 0x202   : > { %v1100_v56 = vsub.f32 1.5, %v1099_v54 }
 0x203   : > { %v2012_v57 = vpop.eup %2011 }
 0x204   : > { %v1101_v58 = vmul.f32 %v2010_v49, %v1100_v56  ;;  %v1107_v59 = vmul.f32 %v2012_v57, %v1095_v50  ;;  %vm1113_vm11 = vweird.f32 %v2012_v57 }
 0x205   : > { %vm1114_vm13 = vmor %vm1112_vm12, %vm1113_vm11 }
 0x206   : > { %v1108_v60 = vmul.f32 %v2012_v57, %v1107_v59  ;;  %v1105_v61 = vsel %vm1104_vm10, %v2010_v49, %v1101_v58 }
 0x207   : > { %v1116_v0 = vmul.f32 %v1105_v61, %v1084_v30 }
 0x208   : > { %v1109_v62 = vmul.f32 0.5, %v1108_v60 }
 0x209   : > { %v1119_v5 = vmul.f32 %v1118_v1, %v1116_v0 }
 0x20a   : > { %v1110_v63 = vsub.f32 1.5, %v1109_v62 }
 0x20b   : > { %v1122_v8 = vadd.f32 %v1121_v6, %v1119_v5 }
 0x20c   : > { %v1111_v2 = vmul.f32 %v2012_v57, %v1110_v63 }
 0x20e   : > { %v1115_v3 = vsel %vm1114_vm13, %v2012_v57, %v1111_v2 }
 0x20f   : > { %v1117_v4 = vmul.f32 %v1115_v3, %v1085_v34 }
 0x211   : > { %v1120_v7 = vmul.f32 %v1118_v1, %v1117_v4 }
 0x213   : > { %v1123_v9 = vadd.f32 %v1121_v6, %v1120_v7 }
 0x215   : > { %v1124_v10 = vpack.c.bf16 %v1123_v9, %v1122_v8 }
 0x217   : > { %1198 = vmatmul.bf16.vlgmr.msra.gmra.mxu0 %v1124_v10 }
 0x294   : > { %v1199_v15 = vpop.f32.mrf.mxu0 }
 0x295   : > { %v1200_v17 = vadd.f32 %v1199_v15, %v1141_v16 }
 0x297   : > { %v1204_v20 = vmax.f32 %v1200_v17, 0.0 }
 0x29c   : > { %v1201_v18 = vpop.f32.mrf.mxu0 }
 0x29d   : > { %v1202_v19 = vadd.f32 %v1201_v18, %v1141_v16 }
 0x29f   : > { %v1205_v21 = vmax.f32 %v1202_v19, 0.0 }
 0x2a1   : > { %v1206_v22 = vpack.c.bf16 %v1205_v21, %v1204_v20 }
 0x2a3   : > { %1281 = vmatmul.bf16.vlgmr.msra.gmra.mxu1 %v1206_v22 }
 0x320   : > { %v1282_v28 = vpop.f32.mrf.mxu1 }
 0x321   : > { %v1283_v29 = vadd.f32 %v1282_v28, %v1224_v23 }
 0x323   : > { %1287 = vadd.xlane.f32.xlu2 %v1283_v29 }
 0x328   : > { %v1284_v30 = vpop.f32.mrf.mxu1 }
 0x329   : > { %v1285_v31 = vadd.f32 %v1284_v30, %v1224_v23 }
 0x32b   : > { %1289 = vadd.xlane.f32.xlu2 %v1285_v31 }
 0x396   : > { %v1288_v32 = vpop.xlane.xlu2 %1287 }
 0x397   : > { %v1291_v33 = vmul.f32 %v1288_v32, %v2453_v27 }
 0x399   : > { %v1293_v34 = vsub.f32 %v1283_v29, %v1291_v33 }
 0x39b   : > { %v1295_v35 = vmul.f32 %v1293_v34, %v1293_v34 }
 0x39d   : > { %1297 = vadd.xlane.f32.xlu0 %v1295_v35 }
 0x39e   : > { %v1290_v36 = vpop.xlane.xlu2 %1289 }
 0x39f   : > { %v1292_v37 = vmul.f32 %v1290_v36, %v2453_v27 }
 0x3a1   : > { %v1294_v38 = vsub.f32 %v1285_v31, %v1292_v37 }
 0x3a3   : > { %v1296_v39 = vmul.f32 %v1294_v38, %v1294_v38 }
 0x3a5   : > { %1299 = vadd.xlane.f32.xlu1 %v1296_v39 }
 0x410   : > { %v1298_v24 = vpop.xlane.xlu0 %1297 }
 0x411   : > { %v1301_v25 = vmul.f32 %v1298_v24, %v2453_v27 }
 0x413   : > { %v1303_v26 = vadd.f32 1e-05, %v1301_v25 }
 0x415   : > { %2013 = vrsqrt.f32 %v1303_v26  ;;  %vm1311_vm15 = vweird.f32 %v1303_v26 }
 0x418   : > { %v1300_v40 = vpop.xlane.xlu1 %1299 }
 0x419   : > { %v1302_v41 = vmul.f32 %v1300_v40, %v2453_v27  ;;  %v1330_v27 = vperm.slane %v2450_v46, 6 }
 0x41b   : > { %v2014_v42 = vpop.eup %2013  ;;  %v1304_v43 = vadd.f32 1e-05, %v1302_v41 }
 0x41c   : > { %v1306_v44 = vmul.f32 %v2014_v42, %v1303_v26  ;;  %vm1312_vm14 = vweird.f32 %v2014_v42 }
 0x41d   : > { %2015 = vrsqrt.f32 %v1304_v43  ;;  %vm1313_vm0 = vmor %vm1311_vm15, %vm1312_vm14  ;;  %vm1321_vm2 = vweird.f32 %v1304_v43 }
 0x41e   : > { %v1307_v45 = vmul.f32 %v2014_v42, %v1306_v44 }
 0x420   : > { %v1308_v47 = vmul.f32 0.5, %v1307_v45 }
 0x422   : > { %v1309_v48 = vsub.f32 1.5, %v1308_v47 }
 0x423   : > { %v2016_v49 = vpop.eup %2015 }
 0x424   : > { %v1310_v50 = vmul.f32 %v2014_v42, %v1309_v48  ;;  %v1316_v51 = vmul.f32 %v2016_v49, %v1304_v43  ;;  %vm1322_vm1 = vweird.f32 %v2016_v49 }
 0x425   : > { %vm1323_vm3 = vmor %vm1321_vm2, %vm1322_vm1 }
 0x426   : > { %v1314_v53 = vsel %vm1313_vm0, %v2014_v42, %v1310_v50  ;;  %v1317_v54 = vmul.f32 %v2016_v49, %v1316_v51 }
 0x427   : > { %v1325_v55 = vmul.f32 %v1314_v53, %v1293_v34 }
 0x428   : > { %v1318_v56 = vmul.f32 0.5, %v1317_v54 }
 0x429   : > { %v1328_v57 = vmul.f32 %v1327_v52, %v1325_v55 }
 0x42a   : > { %v1319_v58 = vsub.f32 1.5, %v1318_v56 }
 0x42b   : > { %v1331_v59 = vadd.f32 %v1330_v27, %v1328_v57 }
 0x42c   : > { %v1320_v60 = vmul.f32 %v2016_v49, %v1319_v58 }
 0x42d   : > { %1333 = vst [vmem:[%s371_s8] sm:$0xff] %v1331_v59 }
 0x42e   : > { %v1324_v61 = vsel %vm1323_vm3, %v2016_v49, %v1320_v60 }
 0x42f   : > { %v1326_v62 = vmul.f32 %v1324_v61, %v1294_v38 }
 0x431   : > { %v1329_v63 = vmul.f32 %v1327_v52, %v1326_v62 }
 0x433   : > { %v1332_v0 = vadd.f32 %v1330_v27, %v1329_v63 }
 0x435   : > { %1334 = vst [vmem:[%s371_s8 + $0x8] sm:$0xff] %v1332_v0 }
 0x436 PF: > { %s22_s23 = sadd.s32 1, %s2229_s23   ;;  %s2512_s18 = smov %s2213_s19 }
 0x437   : > { %p19_p2 = scmp.ge.s32.totalorder %s22_s23, 4   ;;  %s2513_s19 = smov %s2217_s20 }
 0x438   : > { %s2514_s20 = smov %s2357_s12  ;;  %s2515_s21 = smov %s2225_s22 }
 0x439   : > { %s2516_s22 = smov %s2518_s29  ;;  %21 = sbr.rel (!%p19_p2) target bundleno = 11 (0xb), region = 106 }
 0x43e   :  { %1365 = vsyncpa [#allocation3], 1 }
 0x43f   :  { %1367 = vsyncpa [#allocation3 + $0x1], 1 }
 0x440   :  { %1368 = vsyncpa [#allocation5], 1 }
 0x441   :  { %1370 = vsyncpa [#allocation5 + $0x1], 1 }
 0x442   :  { %1371 = vsyncpa [#allocation8], 1 }

// kernel: tpu_custom_call.1
= control target key start
LH: loop header
LB: loop body
LE: loop exit
PB: predicated region body
PF: predicated region fallthrough
CT: control target
= control target key end

     0   :  { %s2492_s0 = inlined_call_operand.hbm [shape: f32[2,32,128], index: 0, kind: input, shape index: {}]   ;;  %s2493_s1 = inlined_call_operand.hbm [shape: f32[2,32,128], index: 1, kind: input, shape index: {}]   ;;  %s2494_s2 = inlined_call_operand.hbm [shape: bf16[1024,128], index: 2, kind: input, shape index: {}]   ;;  %s2495_s3 = inlined_call_operand.hbm [shape: bf16[2,128,128], index: 3, kind: input, shape index: {}]   ;;  %s2496_s4 = inlined_call_operand.hbm [shape: f32[8,128], index: 4, kind: input, shape index: {}]   ;;  %s2497_s5 = inlined_call_operand.vmem [shape: f32[2,15,128], index: 5, kind: output, shape index: {}]  }
   0x1   :  { %2499 = sst [smem:[#allocation14_spill]] %s2492_s0 }
   0x2   :  { %2500 = sst [smem:[#allocation15_spill]] %s2494_s2 }
   0x3   :  { %2501 = sst [smem:[#allocation16_spill]] %s2495_s3 }
   0x4   :  { %10 = vsyncpa [#allocation3], 0 }
   0x5   :  { %12 = vsyncpa [#allocation3 + $0x1], 0 }
   0x6   :  { %13 = vsyncpa [#allocation5], 0 }
   0x7   :  { %15 = vsyncpa [#allocation5 + $0x1], 0 }
   0x8   :  { %16 = vsyncpa [#allocation8], 0  ;;  %s2269_s18 = smov 0   ;;  %s2271_s19 = smov 0  }
   0x9   :  { %s2273_s20 = smov 0   ;;  %s2275_s21 = smov 0  }
   0xa   :  { %s2277_s22 = smov 0   ;;  %s2279_s23 = smov 0  }
   0xb LB: > { %s2498_s24 = sadd.s32 4294967295, %s2229_s23   ;;  %p56_p0 = scmp.ne.s32.totalorder %s2213_s19, %s2209_s18  ;;  %s2229_s23 = sphi %s2279_s23, %s22_s23   ;;  %s2225_s22 = sphi %s2277_s22, %s2516_s22   ;;  %s2221_s21 = sphi %s2275_s21, %s2515_s21   ;;  %s2217_s20 = sphi %s2273_s20, %s2514_s20   ;;  %s2213_s19 = sphi %s2271_s19, %s2513_s19   ;;  %s2209_s18 = sphi %s2269_s18, %s2512_s18  }
   0xc   : > { %p2301_p1 = scmp.eq.s32.totalorder %s2498_s24, 0  ;;  %p1487_p2 = scmp.ge.s32.totalorder %s2229_s23, 1 }
   0xd   : > { %p188_p3 = scmp.lt.s32.totalorder %s2229_s23, 3  ;;  %s2504_s2 = sld [smem:[#allocation15_spill]] }
   0xe   : > { %p2309_p4 = por %p2301_p1, %p56_p0  ;;  %s2231_s6 = smov [#allocation6]  }
   0xf   : > { %p2316_p5 = pnand %p1487_p2, %p188_p3  ;;  %s201_s7 = sshll.u32 %s2231_s6, 4  ;;  %s202_s7 = int_to_ptr.vmem [resolvable:$true] %s201_s7 }
  0x10   : > { %s2507_s3 = sld [smem:[#allocation16_spill]]  ;;  %s2232_s12 = smov 64  }
  0x11   : > { %p1927_p6 = pneg %p2316_p5  ;;  %s2233_s13 = smov 4  }
  0x12   : > { %s2234_s14 = smov [#allocation7]   ;;  %s228_s18 = sshll.u32 %s2496_s4, 4  ;;  %s229_s18 = int_to_ptr.hbm [resolvable:$true] %s228_s18 }
  0x13   : > { %s199_s29 = sshll.u32 %s2504_s2, 4  ;;  %p2324_p7 = pnand %p1927_p6, %p2301_p1  ;;  %s200_s29 = int_to_ptr.hbm [resolvable:$true] %s199_s29 }
  0x14   : > { %s215_s15 = sshll.u32 %s2234_s14, 4  ;;  %s2235_s27 = smov [#allocation9]   ;;  %s216_s15 = int_to_ptr.vmem [resolvable:$true] %s215_s15 }
  0x15   : > { %1930 = dma.hbm_to_vmem [thread:$0]  (!%p2324_p7), %s200_s29, 8192, %s202_s7, [#allocation5], %s2232_s12, %s2232_s12, %s2233_s13  }
  0x16   : > { %s213_s11 = sshll.u32 %s2507_s3, 4  ;;  %s230_s28 = sshll.u32 %s2235_s27, 4  ;;  %s214_s11 = int_to_ptr.hbm [resolvable:$true] %s213_s11  ;;  %s231_s28 = int_to_ptr.vmem [resolvable:$true] %s230_s28 }
  0x17   : > { %1933 = dma.hbm_to_vmem [thread:$0]  (!%p2324_p7), %s214_s11, 2048, %s216_s15, [#allocation8], %s2232_s12, %s2232_s12, %s2233_s13  }
  0x18   : > { %1936 = dma.hbm_to_vmem [thread:$0]  (!%p2324_p7), %s229_s18, 128, %s231_s28, [#allocation8]  }
  0x19   : > { %s31_s29 = sadd.s32 1, %s2225_s22  ;;  %s43_s6 = sadd.s32 1, %s2217_s20 }
  0x1a   : > { %p32_p8 = scmp.ge.s32.totalorder %s31_s29, 2  ;;  %p50_p9 = scmp.ne.s32.totalorder %s2217_s20, %s2213_s19 }
  0x1b   : > { %p51_p10 = scmp.eq.s32.totalorder %s2229_s23, 0  ;;  %p1947_p12 = scmp.lt.s32.totalorder %s2229_s23, 2 }
  0x1c   : > { %s2518_s29 = smov (%p32_p8, %s31_s29), 0  ;;  %s241_s10 = sand.u32 1, %s2217_s20  }
  0x1d   : > { %p2347_p11 = por %p51_p10, %p50_p9  ;;  %s38_s9 = ssub.s32 %s2225_s22, %s2518_s29 }
  0x1e   : > { %p41_p13 = scmp.eq.s32.totalorder %s38_s9, 0  ;;  %s1492_s8 = sshll.u32 %s241_s10, 4 }
  0x1f   : > { %s1828_s11 = sshll.u32 %s2225_s22, 5  ;;  %s2509_s0 = sld [smem:[#allocation14_spill]] }
  0x20   : > { %s2357_s12 = scalar_select %p41_p13, %s2217_s20, %s43_s6  }
  0x21   : > { %s245_s17 = scalar_lea.vmem [#allocation2], %s1492_s8  ;;  %p2366_p0 = pnand %p1947_p12, %p2347_p11 }
  0x22   : > { %s255_s18 = sshll.u32 %s245_s17, 4  ;;  %s1387_s6 = scalar_lea.hbm %s2493_s1, %s1828_s11  ;;  %s256_s18 = int_to_ptr.vmem [resolvable:$true] %s255_s18 }
  0x23   : > { %s242_s13 = scalar_lea.sflag [#allocation3], %s241_s10  ;;  %s2236_s14 = smov 128  }
  0x24   : > { %s1388_s17 = scalar_lea.hbm %s1387_s6, 16  ;;  %s269_s24 = scalar_lea.vmem [#allocation4], %s1492_s8 }
  0x25   : > { %s252_s15 = scalar_lea.hbm %s2509_s0, %s1828_s11  ;;  %s280_s0 = sshll.u32 %s269_s24, 4  ;;  %s281_s0 = int_to_ptr.vmem [resolvable:$true] %s280_s0 }
  0x26   : > { %s253_s16 = sshll.u32 %s252_s15, 4  ;;  %s2237_s15 = smov 8   ;;  %s254_s16 = int_to_ptr.hbm [resolvable:$true] %s253_s16 }
  0x27   : > { %1940 = dma.hbm_to_vmem [thread:$0]  (!%p2366_p0), %s254_s16, 256, %s256_s18, %s242_s13, %s2236_s14, %s2236_s14, %s2237_s15  }
  0x28   : > { %s278_s7 = sshll.u32 %s1388_s17, 4  ;;  %s265_s2 = sand.u32 1, %s2229_s23   ;;  %s279_s7 = int_to_ptr.hbm [resolvable:$true] %s278_s7 }
  0x29   : > { %s266_s3 = scalar_lea.sflag [#allocation5], %s265_s2  ;;  %292 = sbr.rel (%p2316_p5) target bundleno = 1078 (0x436), region = 40 }
  0x2a   : > { %1943 = dma.hbm_to_vmem [thread:$0]  (!%p2366_p0), %s279_s7, 256, %s281_s0, %s266_s3, %s2236_s14, %s2236_s14, %s2237_s15  }
  0x2b   : > { %s294_s10 = sand.u32 (!%p2316_p5), 1, %s2213_s19  }
  0x2c   : > { %s2381_s11 = sshll.u32 (!%p2316_p5), %s294_s10, 4  ;;  %s295_s16 = scalar_lea.sflag (!%p2316_p5), [#allocation3], %s294_s10 }
  0x2d   : > { %s298_s18 = scalar_lea.vmem (!%p2316_p5), [#allocation2], %s2381_s11 }
  0x2e   : > { %2192 = dma.done.wait (%p2309_p4), %s295_s16, 256  }
  0x2f   : > { %2194 = vsyncadd (%p2309_p4), %s295_s16, 4294967040  ;;  %s2511_s2 = sadd.s32 4294967295, %s2229_s23   ;;  %s308_s24 = scalar_lea.vmem [#allocation4], %s2381_s11 }
  0x30   : > { %s304_s0 = sand.u32 1, %s2511_s2  }
  0x31   : > { %s305_s3 = scalar_lea.sflag [#allocation5], %s304_s0 }
  0x32   : > { %2196 = dma.done.wait (%p2309_p4), %s305_s3, 256  }
  0x33   : > { %2198 = vsyncadd (%p2309_p4), %s305_s3, 4294967040 }
  0x34   : > { %2200 = dma.done.wait (%p2301_p1), [#allocation5], 8192  }
  0x35   : > { %2202 = vsyncadd (%p2301_p1), [#allocation5], 4294959104 }
  0x36   : > { %2204 = dma.done.wait (%p2301_p1), [#allocation8], 2176  }
  0x37   : > { %2206 = vsyncadd (%p2301_p1), [#allocation8], 4294965120  ;;  %v1838_v0 = vld [vmem:[#allocation6 + $0x38] sm:$0xff]  ;;  %v1837_v4 = vld [vmem:[#allocation6 + $0x30] sm:$0xff]  ;;  %vm388_vm0 = vcmask 1045504   ;;  %vm396_vm1 = vcmask 1044480  }
  0x38   : > { %v1846_v1 = vld [vmem:[#allocation6 + $0x78] sm:$0xff]  ;;  %957 = vmatpush.bf16.msra.mxu0 %v1838_v0  ;;  %v1845_v5 = vld [vmem:[#allocation6 + $0x70] sm:$0xff]  ;;  %v1836_v8 = vld [vmem:[#allocation6 + $0x28] sm:$0xff]  ;;  %vm380_vm2 = vcmask 1046528   ;;  %vm404_vm3 = vcmask 1043456   ;;  %vm412_vm4 = vcmask 1042432  }
  0x39   : > { %v1854_v2 = vld [vmem:[#allocation6 + $0xb8] sm:$0xff]  ;;  %971 = vmatpush.bf16.msra.mxu1 %v1846_v1  ;;  %v1853_v6 = vld [vmem:[#allocation6 + $0xb0] sm:$0xff]  ;;  %v1844_v9 = vld [vmem:[#allocation6 + $0x68] sm:$0xff]  ;;  %vm420_vm5 = vcmask 1041408   ;;  %vm428_vm6 = vcmask 1040384   ;;  %p364_p1 = scmp.lt.s32.totalorder %s2221_s21, 1 }
  0x3a   : > { %v1862_v3 = vld [vmem:[#allocation6 + $0xf8] sm:$0xff]  ;;  %985 = vmatpush.bf16.msra.mxu2 %v1854_v2  ;;  %v1861_v7 = vld [vmem:[#allocation6 + $0xf0] sm:$0xff]  ;;  %v1852_v10 = vld [vmem:[#allocation6 + $0xa8] sm:$0xff] }
  0x3b   : > { %999 = vmatpush.bf16.msra.mxu3 %v1862_v3  ;;  %v1860_v11 = vld [vmem:[#allocation6 + $0xe8] sm:$0xff]  ;;  %v1835_v12 = vld [vmem:[#allocation6 + $0x20] sm:$0xff]  ;;  %v1834_v16 = vld [vmem:[#allocation6 + $0x18] sm:$0xff]  ;;  %s2520_s21 = smov (!%p364_p1, %s2221_s21), 1 }
  0x3c   : > { %958 = vmatpush.bf16.msra.mxu0 %v1837_v4  ;;  %v1843_v13 = vld [vmem:[#allocation6 + $0x60] sm:$0xff]  ;;  %v1842_v17 = vld [vmem:[#allocation6 + $0x58] sm:$0xff]  ;;  %v1833_v20 = vld [vmem:[#allocation6 + $0x10] sm:$0xff]  ;;  %s1830_s25 = sshll.u32 %s2520_s21, 4 }
  0x3d   : > { %972 = vmatpush.bf16.msra.mxu1 %v1845_v5  ;;  %v1851_v14 = vld [vmem:[#allocation6 + $0xa0] sm:$0xff]  ;;  %v1850_v18 = vld [vmem:[#allocation6 + $0x98] sm:$0xff]  ;;  %v1841_v21 = vld [vmem:[#allocation6 + $0x50] sm:$0xff]  ;;  %s371_s8 = scalar_lea.vmem %s2497_s5, %s1830_s25 }
  0x3e   : > { %986 = vmatpush.bf16.msra.mxu2 %v1853_v6  ;;  %v1859_v15 = vld [vmem:[#allocation6 + $0xe0] sm:$0xff]  ;;  %v1858_v19 = vld [vmem:[#allocation6 + $0xd8] sm:$0xff]  ;;  %v1849_v22 = vld [vmem:[#allocation6 + $0x90] sm:$0xff] }
  0x3f   : > { %1000 = vmatpush.bf16.msra.mxu3 %v1861_v7  ;;  %v1857_v23 = vld [vmem:[#allocation6 + $0xd0] sm:$0xff]  ;;  %v2409_v25 = vld [vmem:[%s298_s18 + $0x8] sm:$0xff]  ;;  %v1831_v40 = vld [vmem:[#allocation6] sm:$0xff] }
  0x40   : > { %959 = vmatpush.bf16.msra.mxu0 %v1836_v8  ;;  %v2405_v24 = vld [vmem:[%s298_s18] sm:$0xff]  ;;  %v1832_v27 = vld [vmem:[#allocation6 + $0x8] sm:$0xff]  ;;  %v390_v32 = vrot.slane %v2409_v25, 2  ;;  %v398_v35 = vrot.slane %v2409_v25, 3  ;;  %v382_v38 = vrot.slane %v2409_v25, 1  ;;  %v1870_v46 = vld [vmem:[#allocation6 + $0x138] sm:$0xff] }
  0x41   : > { %973 = vmatpush.bf16.msra.mxu1 %v1844_v9  ;;  %v2413_v26 = vld [vmem:[%s308_s24] sm:$0xff]  ;;  %v1840_v28 = vld [vmem:[#allocation6 + $0x48] sm:$0xff]  ;;  %v389_v29 = vrot.slane %v2405_v24, 2  ;;  %v397_v34 = vrot.slane %v2405_v24, 3  ;;  %v381_v37 = vrot.slane %v2405_v24, 1  ;;  %v1878_v47 = vld [vmem:[#allocation6 + $0x178] sm:$0xff]  ;;  %v436_v55 = vpack.c.bf16 %v2409_v25, %v2405_v24 }
  0x42   : > { %987 = vmatpush.bf16.msra.mxu2 %v1852_v10  ;;  %v1848_v30 = vld [vmem:[#allocation6 + $0x88] sm:$0xff]  ;;  %v392_v33 = vrot.slane %v2413_v26, 2  ;;  %v400_v36 = vrot.slane %v2413_v26, 3  ;;  %v384_v39 = vrot.slane %v2413_v26, 1  ;;  %v1839_v41 = vld [vmem:[#allocation6 + $0x40] sm:$0xff]  ;;  %v1886_v52 = vld [vmem:[#allocation6 + $0x1b8] sm:$0xff] }
  0x43   : > { %1001 = vmatpush.bf16.msra.mxu3 %v1860_v11  ;;  %v1856_v31 = vld [vmem:[#allocation6 + $0xc8] sm:$0xff]  ;;  %v1847_v42 = vld [vmem:[#allocation6 + $0x80] sm:$0xff]  ;;  %v391_v44 = vsel %vm388_vm0, %v389_v29, %v390_v32  ;;  %v399_v48 = vsel %vm396_vm1, %v397_v34, %v398_v35  ;;  %v383_v50 = vsel %vm380_vm2, %v381_v37, %v382_v38  ;;  %v1894_v53 = vld [vmem:[#allocation6 + $0x1f8] sm:$0xff]  ;;  %v424_v29 = vrot.slane %v2413_v26, 6 }
  0x44   : > { %960 = vmatpush.bf16.msra.mxu0 %v1835_v12  ;;  %v1855_v43 = vld [vmem:[#allocation6 + $0xc0] sm:$0xff]  ;;  %v393_v45 = vsel %vm388_vm0, %v390_v32, %v392_v33  ;;  %v401_v49 = vsel %vm396_vm1, %v398_v35, %v400_v36  ;;  %v385_v51 = vsel %vm380_vm2, %v382_v38, %v384_v39  ;;  %v1869_v58 = vld [vmem:[#allocation6 + $0x130] sm:$0xff]  ;;  %v1868_v62 = vld [vmem:[#allocation6 + $0x128] sm:$0xff]  ;;  %v432_v32 = vrot.slane %v2413_v26, 7 }
  0x45   : > { %974 = vmatpush.bf16.msra.mxu1 %v1843_v13  ;;  %v438_v54 = vpack.c.bf16 %v393_v45, %v391_v44  ;;  %v439_v56 = vpack.c.bf16 %v401_v49, %v399_v48  ;;  %v437_v57 = vpack.c.bf16 %v385_v51, %v383_v50  ;;  %v1877_v59 = vld [vmem:[#allocation6 + $0x170] sm:$0xff]  ;;  %v1876_v63 = vld [vmem:[#allocation6 + $0x168] sm:$0xff]  ;;  %v1867_v2 = vld [vmem:[#allocation6 + $0x120] sm:$0xff] }
  0x46   : > { %988 = vmatpush.bf16.msra.mxu2 %v1851_v14  ;;  %v1885_v60 = vld [vmem:[#allocation6 + $0x1b0] sm:$0xff]  ;;  %v1884_v0 = vld [vmem:[#allocation6 + $0x1a8] sm:$0xff]  ;;  %v1875_v3 = vld [vmem:[#allocation6 + $0x160] sm:$0xff]  ;;  %v405_v14 = vrot.slane %v2405_v24, 4 }
  0x47   : > { %1002 = vmatpush.bf16.msra.mxu3 %v1859_v15  ;;  %v1893_v61 = vld [vmem:[#allocation6 + $0x1f0] sm:$0xff]  ;;  %v1892_v1 = vld [vmem:[#allocation6 + $0x1e8] sm:$0xff]  ;;  %v1883_v4 = vld [vmem:[#allocation6 + $0x1a0] sm:$0xff]  ;;  %v406_v15 = vrot.slane %v2409_v25, 4 }
  0x48   : > { %961 = vmatpush.bf16.msra.mxu0 %v1834_v16  ;;  %v1891_v5 = vld [vmem:[#allocation6 + $0x1e0] sm:$0xff]  ;;  %v1866_v6 = vld [vmem:[#allocation6 + $0x118] sm:$0xff]  ;;  %v1865_v10 = vld [vmem:[#allocation6 + $0x110] sm:$0xff]  ;;  %v408_v16 = vrot.slane %v2413_v26, 4 }
  0x49   : > { %975 = vmatpush.bf16.msra.mxu1 %v1842_v17  ;;  %v1874_v7 = vld [vmem:[#allocation6 + $0x158] sm:$0xff]  ;;  %v1873_v11 = vld [vmem:[#allocation6 + $0x150] sm:$0xff]  ;;  %v413_v17 = vrot.slane %v2405_v24, 5  ;;  %v407_v33 = vsel %vm404_vm3, %v405_v14, %v406_v15  ;;  %v1863_v35 = vld [vmem:[#allocation6 + $0x100] sm:$0xff] }
  0x4a   : > { %989 = vmatpush.bf16.msra.mxu2 %v1850_v18  ;;  %v1882_v8 = vld [vmem:[#allocation6 + $0x198] sm:$0xff]  ;;  %v1881_v12 = vld [vmem:[#allocation6 + $0x190] sm:$0xff]  ;;  %v414_v18 = vrot.slane %v2409_v25, 5  ;;  %v409_v34 = vsel %vm404_vm3, %v406_v15, %v408_v16  ;;  %v1871_v36 = vld [vmem:[#allocation6 + $0x140] sm:$0xff] }
  0x4b   : > { %1003 = vmatpush.bf16.msra.mxu3 %v1858_v19  ;;  %v1890_v9 = vld [vmem:[#allocation6 + $0x1d8] sm:$0xff]  ;;  %v1889_v13 = vld [vmem:[#allocation6 + $0x1d0] sm:$0xff]  ;;  %v1864_v19 = vld [vmem:[#allocation6 + $0x108] sm:$0xff] }
  0x4c   : > { %962 = vmatpush.bf16.msra.mxu0 %v1833_v20  ;;  %v1872_v20 = vld [vmem:[#allocation6 + $0x148] sm:$0xff]  ;;  %v415_v37 = vsel %vm412_vm4, %v413_v17, %v414_v18 }
  0x4d   : > { %976 = vmatpush.bf16.msra.mxu1 %v1841_v21  ;;  %v416_v21 = vrot.slane %v2413_v26, 5 }
  0x4e   : > { %990 = vmatpush.bf16.msra.mxu2 %v1849_v22  ;;  %v421_v22 = vrot.slane %v2405_v24, 6 }
  0x4f   : > { %1004 = vmatpush.bf16.msra.mxu3 %v1857_v23  ;;  %v422_v23 = vrot.slane %v2409_v25, 6  ;;  %v417_v38 = vsel %vm412_vm4, %v414_v18, %v416_v21  ;;  %v2238_v18 = vmov 128.0  }
  0x50   : > { %963 = vmatpush.bf16.msra.mxu0 %v1832_v27  ;;  %v1880_v27 = vld [vmem:[#allocation6 + $0x188] sm:$0xff]  ;;  %2007 = vrcp.f32 %v2238_v18 }
  0x51   : > { %977 = vmatpush.bf16.msra.mxu1 %v1840_v28  ;;  %v1888_v28 = vld [vmem:[#allocation6 + $0x1c8] sm:$0xff]  ;;  %v423_v39 = vsel %vm420_vm5, %v421_v22, %v422_v23  ;;  %v425_v26 = vsel %vm420_vm5, %v422_v23, %v424_v29 }
  0x52   : > { %991 = vmatpush.bf16.msra.mxu2 %v1848_v30  ;;  %v429_v30 = vrot.slane %v2405_v24, 7  ;;  %v1879_v24 = vld [vmem:[#allocation6 + $0x180] sm:$0xff]  ;;  %v442_v44 = vpack.c.bf16 %v425_v26, %v423_v39  ;;  %v1896_v26 = vld [vmem:[#allocation7 + $0x8] sm:$0xff] }
  0x53   : > { %1005 = vmatpush.bf16.msra.mxu3 %v1856_v31  ;;  %v430_v31 = vrot.slane %v2409_v25, 7  ;;  %v1887_v25 = vld [vmem:[#allocation6 + $0x1c0] sm:$0xff] }
  0x54   : > { %964 = vmatpush.bf16.msra.mxu0 %v1831_v40  ;;  %v1899_v39 = vld [vmem:[#allocation7 + $0x20] sm:$0xff] }
  0x55   : > { %978 = vmatpush.bf16.msra.mxu1 %v1839_v41  ;;  %v431_v40 = vsel %vm428_vm6, %v429_v30, %v430_v31  ;;  %v433_v41 = vsel %vm428_vm6, %v430_v31, %v432_v32 }
  0x56   : > { %992 = vmatpush.bf16.msra.mxu2 %v1847_v42  ;;  %v440_v42 = vpack.c.bf16 %v409_v34, %v407_v33  ;;  %v443_v45 = vpack.c.bf16 %v433_v41, %v431_v40  ;;  %v1895_v41 = vld [vmem:[#allocation7] sm:$0xff] }
  0x57   : > { %1006 = vmatpush.bf16.msra.mxu3 %v1855_v43  ;;  %965 = vmatmul.bf16.vlgmr.msra.gmra.mxu0 %v436_v55  ;;  %v441_v43 = vpack.c.bf16 %v417_v38, %v415_v37  ;;  %v1901_v37 = vld [vmem:[#allocation7 + $0x30] sm:$0xff]  ;;  %v1900_v38 = vld [vmem:[#allocation7 + $0x28] sm:$0xff] }
  0x58   : > { %1013 = vmatpush.bf16.msrb.mxu0 %v1870_v46  ;;  %979 = vmatmul.bf16.vlgmr.msra.gmra.mxu1 %v437_v57  ;;  %v2450_v46 = vld [vmem:[#allocation9] sm:$0xff] }
  0x59   : > { %1027 = vmatpush.bf16.msrb.mxu1 %v1878_v47  ;;  %993 = vmatmul.bf16.vlgmr.msra.gmra.mxu2 %v438_v54  ;;  %v572_v48 = vperm.slane %v2450_v46, 0 }
  0x5a   : > { %1041 = vmatpush.bf16.msrb.mxu2 %v1886_v52  ;;  %1007 = vmatmul.bf16.vlgmr.msra.gmra.mxu3 %v439_v56 }
  0x5b   : > { %1055 = vmatpush.bf16.msrb.mxu3 %v1894_v53 }
  0x5c   : > { %1014 = vmatpush.bf16.msrb.mxu0 %v1869_v58 }
  0x5d   : > { %1028 = vmatpush.bf16.msrb.mxu1 %v1877_v59 }
  0x5e   : > { %1042 = vmatpush.bf16.msrb.mxu2 %v1885_v60 }
  0x5f   : > { %1056 = vmatpush.bf16.msrb.mxu3 %v1893_v61 }
  0x60   : > { %1015 = vmatpush.bf16.msrb.mxu0 %v1868_v62 }
  0x61   : > { %1029 = vmatpush.bf16.msrb.mxu1 %v1876_v63 }
  0x62   : > { %1043 = vmatpush.bf16.msrb.mxu2 %v1884_v0 }
  0x63   : > { %1057 = vmatpush.bf16.msrb.mxu3 %v1892_v1 }
  0x64   : > { %1016 = vmatpush.bf16.msrb.mxu0 %v1867_v2 }
  0x65   : > { %1030 = vmatpush.bf16.msrb.mxu1 %v1875_v3 }
  0x66   : > { %1044 = vmatpush.bf16.msrb.mxu2 %v1883_v4 }
  0x67   : > { %1058 = vmatpush.bf16.msrb.mxu3 %v1891_v5 }
  0x68   : > { %1017 = vmatpush.bf16.msrb.mxu0 %v1866_v6 }
  0x69   : > { %1031 = vmatpush.bf16.msrb.mxu1 %v1874_v7 }
  0x6a   : > { %1045 = vmatpush.bf16.msrb.mxu2 %v1882_v8 }
  0x6b   : > { %1059 = vmatpush.bf16.msrb.mxu3 %v1890_v9 }
  0x6c   : > { %1018 = vmatpush.bf16.msrb.mxu0 %v1865_v10 }
  0x6d   : > { %1032 = vmatpush.bf16.msrb.mxu1 %v1873_v11 }
  0x6e   : > { %1046 = vmatpush.bf16.msrb.mxu2 %v1881_v12 }
  0x6f   : > { %1060 = vmatpush.bf16.msrb.mxu3 %v1889_v13 }
  0x70   : > { %1019 = vmatpush.bf16.msrb.mxu0 %v1864_v19  ;;  %v2008_v19 = vpop.eup %2007 }
  0x71   : > { %1033 = vmatpush.bf16.msrb.mxu1 %v1872_v20  ;;  %v1076_v20 = vmul.f32 128.0, %v2008_v19  ;;  %vm1080_vm7 = vweird.f32 %v2008_v19 }
  0x72   : > { %1047 = vmatpush.bf16.msrb.mxu2 %v1880_v27 }
  0x73   : > { %1061 = vmatpush.bf16.msrb.mxu3 %v1888_v28  ;;  %v1077_v21 = vsub.f32 1.0, %v1076_v20 }
  0x74   : > { %1020 = vmatpush.bf16.msrb.mxu0 %v1863_v35 }
  0x75   : > { %1034 = vmatpush.bf16.msrb.mxu1 %v1871_v36  ;;  %v1078_v22 = vmul.f32 %v2008_v19, %v1077_v21  ;;  %v1902_v36 = vld [vmem:[#allocation7 + $0x38] sm:$0xff] }
  0x76   : > { %1048 = vmatpush.bf16.msrb.mxu2 %v1879_v24  ;;  %v1898_v24 = vld [vmem:[#allocation7 + $0x18] sm:$0xff] }
  0x77   : > { %1062 = vmatpush.bf16.msrb.mxu3 %v1887_v25  ;;  %1021 = vmatmul.bf16.vlgmr.msrb.gmra.mxu0 %v440_v42  ;;  %v1079_v23 = vadd.f32 %v2008_v19, %v1078_v22  ;;  %v1897_v25 = vld [vmem:[#allocation7 + $0x10] sm:$0xff] }
  0x78   : > { %1035 = vmatmul.bf16.vlgmr.msrb.gmra.mxu1 %v441_v43  ;;  %1190 = vmatpush.bf16.msra.mxu0 %v1902_v36 }
  0x79   : > { %1049 = vmatmul.bf16.vlgmr.msrb.gmra.mxu2 %v442_v44  ;;  %v2453_v27 = vsel %vm1080_vm7, %v2008_v19, %v1079_v23  ;;  %v1910_v44 = vld [vmem:[#allocation7 + $0x78] sm:$0xff]  ;;  %v1224_v23 = vperm.slane %v2450_v46, 4 }
  0x7a   : > { %1063 = vmatmul.bf16.vlgmr.msrb.gmra.mxu3 %v443_v45  ;;  %1273 = vmatpush.bf16.msra.mxu1 %v1910_v44 }
  0x7c   : > { %1191 = vmatpush.bf16.msra.mxu0 %v1901_v37 }
  0x80   : > { %1192 = vmatpush.bf16.msra.mxu0 %v1900_v38 }
  0x84   : > { %1193 = vmatpush.bf16.msra.mxu0 %v1899_v39 }
  0x88   : > { %1194 = vmatpush.bf16.msra.mxu0 %v1898_v24 }
  0x8c   : > { %1195 = vmatpush.bf16.msra.mxu0 %v1897_v25 }
  0x90   : > { %1196 = vmatpush.bf16.msra.mxu0 %v1896_v26 }
  0x94   : > { %1197 = vmatpush.bf16.msra.mxu0 %v1895_v41 }
  0xd4   : > { %v966_v47 = vpop.f32.mrf.mxu0 }
  0xd5   : > { %v980_v49 = vpop.f32.mrf.mxu1  ;;  %v967_v50 = vadd.f32 %v966_v47, %v572_v48 }
  0xd7   : > { %v981_v53 = vadd.f32 %v980_v49, %v967_v50 }
  0xdc   : > { %v994_v51 = vpop.f32.mrf.mxu2  ;;  %v968_v54 = vpop.f32.mrf.mxu0 }
  0xdd   : > { %v1008_v52 = vpop.f32.mrf.mxu3  ;;  %v982_v55 = vpop.f32.mrf.mxu1  ;;  %v995_v56 = vadd.f32 %v994_v51, %v981_v53  ;;  %v969_v57 = vadd.f32 %v968_v54, %v572_v48  ;;  %v1909_v48 = vld [vmem:[#allocation7 + $0x70] sm:$0xff] }
  0xde   : > { %1274 = vmatpush.bf16.msra.mxu1 %v1909_v48 }
  0xdf   : > { %v1009_v60 = vadd.f32 %v1008_v52, %v995_v56  ;;  %v983_v61 = vadd.f32 %v982_v55, %v969_v57  ;;  %v1908_v52 = vld [vmem:[#allocation7 + $0x68] sm:$0xff]  ;;  %v1907_v55 = vld [vmem:[#allocation7 + $0x60] sm:$0xff] }
  0xe2   : > { %1275 = vmatpush.bf16.msra.mxu1 %v1908_v52  ;;  %v1327_v52 = vperm.slane %v2450_v46, 5 }
  0xe4   : > { %v996_v58 = vpop.f32.mrf.mxu2 }
  0xe5   : > { %v1010_v59 = vpop.f32.mrf.mxu3  ;;  %v997_v1 = vadd.f32 %v996_v58, %v983_v61 }
  0xe6   : > { %1276 = vmatpush.bf16.msra.mxu1 %v1907_v55 }
  0xe7   : > { %v1011_v5 = vadd.f32 %v1010_v59, %v997_v1  ;;  %v1118_v1 = vperm.slane %v2450_v46, 1 }
  0xf4   : > { %v1022_v62 = vpop.f32.mrf.mxu0 }
  0xf5   : > { %v1023_v63 = vadd.f32 %v1022_v62, %v1009_v60  ;;  %v1036_v0 = vpop.f32.mrf.mxu1 }
  0xf7   : > { %v1037_v2 = vadd.f32 %v1036_v0, %v1023_v63 }
  0xfc   : > { %v1050_v3 = vpop.f32.mrf.mxu2  ;;  %v1024_v7 = vpop.f32.mrf.mxu0 }
  0xfd   : > { %v1064_v4 = vpop.f32.mrf.mxu3  ;;  %v1051_v6 = vadd.f32 %v1050_v3, %v1037_v2  ;;  %v1025_v9 = vadd.f32 %v1024_v7, %v1011_v5  ;;  %v1038_v11 = vpop.f32.mrf.mxu1 }
  0xff   : > { %v1065_v8 = vadd.f32 %v1064_v4, %v1051_v6  ;;  %v1039_v12 = vadd.f32 %v1038_v11, %v1025_v9  ;;  %v1121_v6 = vperm.slane %v2450_v46, 2  ;;  %v1906_v11 = vld [vmem:[#allocation7 + $0x58] sm:$0xff] }
 0x100   : > { %1277 = vmatpush.bf16.msra.mxu1 %v1906_v11 }
 0x101   : > { %v1069_v10 = vmax.f32 %v1065_v8, 0.0 }
 0x103   : > { %1071 = vadd.xlane.f32.xlu0 %v1069_v10 }
 0x104   : > { %v1052_v13 = vpop.f32.mrf.mxu2 }
 0x105   : > { %v1053_v14 = vadd.f32 %v1052_v13, %v1039_v12  ;;  %v1066_v15 = vpop.f32.mrf.mxu3  ;;  %v1905_v12 = vld [vmem:[#allocation7 + $0x50] sm:$0xff]  ;;  %v1904_v13 = vld [vmem:[#allocation7 + $0x48] sm:$0xff] }
 0x106   : > { %1278 = vmatpush.bf16.msra.mxu1 %v1905_v12 }
 0x107   : > { %v1067_v16 = vadd.f32 %v1066_v15, %v1053_v14  ;;  %v1903_v14 = vld [vmem:[#allocation7 + $0x40] sm:$0xff] }
 0x109   : > { %v1070_v17 = vmax.f32 %v1067_v16, 0.0  ;;  %v1141_v16 = vperm.slane %v2450_v46, 3 }
 0x10a   : > { %1279 = vmatpush.bf16.msra.mxu1 %v1904_v13 }
 0x10b   : > { %1073 = vadd.xlane.f32.xlu0 %v1070_v17 }
 0x10e   : > { %1280 = vmatpush.bf16.msra.mxu1 %v1903_v14 }
 0x176   : > { %v1072_v28 = vpop.xlane.xlu0 %1071 }
 0x177   : > { %v1082_v29 = vmul.f32 %v2453_v27, %v1072_v28 }
 0x179   : > { %v1084_v30 = vsub.f32 %v1069_v10, %v1082_v29 }
 0x17b   : > { %v1086_v31 = vmul.f32 %v1084_v30, %v1084_v30 }
 0x17d   : > { %1088 = vadd.xlane.f32.xlu1 %v1086_v31 }
 0x17e   : > { %v1074_v32 = vpop.xlane.xlu0 %1073 }
 0x17f   : > { %v1083_v33 = vmul.f32 %v2453_v27, %v1074_v32 }
 0x181   : > { %v1085_v34 = vsub.f32 %v1070_v17, %v1083_v33 }
 0x183   : > { %v1087_v35 = vmul.f32 %v1085_v34, %v1085_v34 }
 0x185   : > { %1090 = vadd.xlane.f32.xlu1 %v1087_v35 }
 0x1f0   : > { %v1089_v40 = vpop.xlane.xlu1 %1088 }
 0x1f1   : > { %v1092_v42 = vmul.f32 %v1089_v40, %v2453_v27 }
 0x1f3   : > { %v1094_v43 = vadd.f32 1e-05, %v1092_v42 }
 0x1f5   : > { %2009 = vrsqrt.f32 %v1094_v43  ;;  %vm1102_vm9 = vweird.f32 %v1094_v43 }
 0x1f8   : > { %v1091_v45 = vpop.xlane.xlu1 %1090 }
 0x1f9   : > { %v1093_v47 = vmul.f32 %v1091_v45, %v2453_v27 }
 0x1fb   : > { %v2010_v49 = vpop.eup %2009  ;;  %v1095_v50 = vadd.f32 1e-05, %v1093_v47 }
 0x1fc   : > { %v1097_v51 = vmul.f32 %v2010_v49, %v1094_v43  ;;  %vm1103_vm8 = vweird.f32 %v2010_v49 }
 0x1fd   : > { %2011 = vrsqrt.f32 %v1095_v50  ;;  %vm1104_vm10 = vmor %vm1102_vm9, %vm1103_vm8  ;;  %vm1112_vm12 = vweird.f32 %v1095_v50 }
 0x1fe   : > { %v1098_v53 = vmul.f32 %v2010_v49, %v1097_v51 }
 0x200   : > { %v1099_v54 = vmul.f32 0.5, %v1098_v53 }
 0x202   : > { %v1100_v56 = vsub.f32 1.5, %v1099_v54 }
 0x203   : > { %v2012_v57 = vpop.eup %2011 }
 0x204   : > { %v1101_v58 = vmul.f32 %v2010_v49, %v1100_v56  ;;  %v1107_v59 = vmul.f32 %v2012_v57, %v1095_v50  ;;  %vm1113_vm11 = vweird.f32 %v2012_v57 }
 0x205   : > { %vm1114_vm13 = vmor %vm1112_vm12, %vm1113_vm11 }
 0x206   : > { %v1108_v60 = vmul.f32 %v2012_v57, %v1107_v59  ;;  %v1105_v61 = vsel %vm1104_vm10, %v2010_v49, %v1101_v58 }
 0x207   : > { %v1116_v0 = vmul.f32 %v1105_v61, %v1084_v30 }
 0x208   : > { %v1109_v62 = vmul.f32 0.5, %v1108_v60 }
 0x209   : > { %v1119_v5 = vmul.f32 %v1118_v1, %v1116_v0 }
 0x20a   : > { %v1110_v63 = vsub.f32 1.5, %v1109_v62 }
 0x20b   : > { %v1122_v8 = vadd.f32 %v1121_v6, %v1119_v5 }
 0x20c   : > { %v1111_v2 = vmul.f32 %v2012_v57, %v1110_v63 }
 0x20e   : > { %v1115_v3 = vsel %vm1114_vm13, %v2012_v57, %v1111_v2 }
 0x20f   : > { %v1117_v4 = vmul.f32 %v1115_v3, %v1085_v34 }
 0x211   : > { %v1120_v7 = vmul.f32 %v1118_v1, %v1117_v4 }
 0x213   : > { %v1123_v9 = vadd.f32 %v1121_v6, %v1120_v7 }
 0x215   : > { %v1124_v10 = vpack.c.bf16 %v1123_v9, %v1122_v8 }
 0x217   : > { %1198 = vmatmul.bf16.vlgmr.msra.gmra.mxu0 %v1124_v10 }
 0x294   : > { %v1199_v15 = vpop.f32.mrf.mxu0 }
 0x295   : > { %v1200_v17 = vadd.f32 %v1199_v15, %v1141_v16 }
 0x297   : > { %v1204_v20 = vmax.f32 %v1200_v17, 0.0 }
 0x29c   : > { %v1201_v18 = vpop.f32.mrf.mxu0 }
 0x29d   : > { %v1202_v19 = vadd.f32 %v1201_v18, %v1141_v16 }
 0x29f   : > { %v1205_v21 = vmax.f32 %v1202_v19, 0.0 }
 0x2a1   : > { %v1206_v22 = vpack.c.bf16 %v1205_v21, %v1204_v20 }
 0x2a3   : > { %1281 = vmatmul.bf16.vlgmr.msra.gmra.mxu1 %v1206_v22 }
 0x320   : > { %v1282_v28 = vpop.f32.mrf.mxu1 }
 0x321   : > { %v1283_v29 = vadd.f32 %v1282_v28, %v1224_v23 }
 0x323   : > { %1287 = vadd.xlane.f32.xlu2 %v1283_v29 }
 0x328   : > { %v1284_v30 = vpop.f32.mrf.mxu1 }
 0x329   : > { %v1285_v31 = vadd.f32 %v1284_v30, %v1224_v23 }
 0x32b   : > { %1289 = vadd.xlane.f32.xlu2 %v1285_v31 }
 0x396   : > { %v1288_v32 = vpop.xlane.xlu2 %1287 }
 0x397   : > { %v1291_v33 = vmul.f32 %v1288_v32, %v2453_v27 }
 0x399   : > { %v1293_v34 = vsub.f32 %v1283_v29, %v1291_v33 }
 0x39b   : > { %v1295_v35 = vmul.f32 %v1293_v34, %v1293_v34 }
 0x39d   : > { %1297 = vadd.xlane.f32.xlu0 %v1295_v35 }
 0x39e   : > { %v1290_v36 = vpop.xlane.xlu2 %1289 }
 0x39f   : > { %v1292_v37 = vmul.f32 %v1290_v36, %v2453_v27 }
 0x3a1   : > { %v1294_v38 = vsub.f32 %v1285_v31, %v1292_v37 }
 0x3a3   : > { %v1296_v39 = vmul.f32 %v1294_v38, %v1294_v38 }
 0x3a5   : > { %1299 = vadd.xlane.f32.xlu1 %v1296_v39 }
 0x410   : > { %v1298_v24 = vpop.xlane.xlu0 %1297 }
 0x411   : > { %v1301_v25 = vmul.f32 %v1298_v24, %v2453_v27 }
 0x413   : > { %v1303_v26 = vadd.f32 1e-05, %v1301_v25 }
 0x415   : > { %2013 = vrsqrt.f32 %v1303_v26  ;;  %vm1311_vm15 = vweird.f32 %v1303_v26 }
 0x418   : > { %v1300_v40 = vpop.xlane.xlu1 %1299 }
 0x419   : > { %v1302_v41 = vmul.f32 %v1300_v40, %v2453_v27  ;;  %v1330_v27 = vperm.slane %v2450_v46, 6 }
 0x41b   : > { %v2014_v42 = vpop.eup %2013  ;;  %v1304_v43 = vadd.f32 1e-05, %v1302_v41 }
 0x41c   : > { %v1306_v44 = vmul.f32 %v2014_v42, %v1303_v26  ;;  %vm1312_vm14 = vweird.f32 %v2014_v42 }
 0x41d   : > { %2015 = vrsqrt.f32 %v1304_v43  ;;  %vm1313_vm0 = vmor %vm1311_vm15, %vm1312_vm14  ;;  %vm1321_vm2 = vweird.f32 %v1304_v43 }
 0x41e   : > { %v1307_v45 = vmul.f32 %v2014_v42, %v1306_v44 }
 0x420   : > { %v1308_v47 = vmul.f32 0.5, %v1307_v45 }
 0x422   : > { %v1309_v48 = vsub.f32 1.5, %v1308_v47 }
 0x423   : > { %v2016_v49 = vpop.eup %2015 }
 0x424   : > { %v1310_v50 = vmul.f32 %v2014_v42, %v1309_v48  ;;  %v1316_v51 = vmul.f32 %v2016_v49, %v1304_v43  ;;  %vm1322_vm1 = vweird.f32 %v2016_v49 }
 0x425   : > { %vm1323_vm3 = vmor %vm1321_vm2, %vm1322_vm1 }
 0x426   : > { %v1314_v53 = vsel %vm1313_vm0, %v2014_v42, %v1310_v50  ;;  %v1317_v54 = vmul.f32 %v2016_v49, %v1316_v51 }
 0x427   : > { %v1325_v55 = vmul.f32 %v1314_v53, %v1293_v34 }
 0x428   : > { %v1318_v56 = vmul.f32 0.5, %v1317_v54 }
 0x429   : > { %v1328_v57 = vmul.f32 %v1327_v52, %v1325_v55 }
 0x42a   : > { %v1319_v58 = vsub.f32 1.5, %v1318_v56 }
 0x42b   : > { %v1331_v59 = vadd.f32 %v1330_v27, %v1328_v57 }
 0x42c   : > { %v1320_v60 = vmul.f32 %v2016_v49, %v1319_v58 }
 0x42d   : > { %1333 = vst [vmem:[%s371_s8] sm:$0xff] %v1331_v59 }
 0x42e   : > { %v1324_v61 = vsel %vm1323_vm3, %v2016_v49, %v1320_v60 }
 0x42f   : > { %v1326_v62 = vmul.f32 %v1324_v61, %v1294_v38 }
 0x431   : > { %v1329_v63 = vmul.f32 %v1327_v52, %v1326_v62 }
 0x433   : > { %v1332_v0 = vadd.f32 %v1330_v27, %v1329_v63 }
 0x435   : > { %1334 = vst [vmem:[%s371_s8 + $0x8] sm:$0xff] %v1332_v0 }
 0x436 PF: > { %s22_s23 = sadd.s32 1, %s2229_s23   ;;  %s2512_s18 = smov %s2213_s19 }
 0x437   : > { %p19_p2 = scmp.ge.s32.totalorder %s22_s23, 4   ;;  %s2513_s19 = smov %s2217_s20 }
 0x438   : > { %s2514_s20 = smov %s2357_s12  ;;  %s2515_s21 = smov %s2225_s22 }
 0x439   : > { %s2516_s22 = smov %s2518_s29  ;;  %21 = sbr.rel (!%p19_p2) target bundleno = 11 (0xb), region = 106 }
 0x43e   :  { %1365 = vsyncpa [#allocation3], 1 }
 0x43f   :  { %1367 = vsyncpa [#allocation3 + $0x1], 1 }
 0x440   :  { %1368 = vsyncpa [#allocation5], 1 }
 0x441   :  { %1370 = vsyncpa [#allocation5 + $0x1], 1 }
 0x442   :  { %1371 = vsyncpa [#allocation8], 1 }

</bundles_post_ra>
